<compile_context>
chip_gen: v7x
topology: tpu7x:2x2x1
jax: 0.10.0
libtpu: 0.0.40
codegen_flags: <defaults>
</compile_context>

<pallas_src>
import functools

import jax
import jax.numpy as jnp
from jax import lax
from jax.experimental import pallas as pl
from jax.experimental.pallas import tpu as pltpu


# ------------------------- config (mirrors the PyTorch Config) -------------------------
WORD_EMBED_SIZE = 10     # E
LSTM_HIDDEN_SIZE = 20    # H
LABEL_SIZE = 17          # L
BATCH_SIZE = 5           # B (Config.batch_size)
SEQ_LEN = 8              # T (small seq length for the example)
VOCAB_SIZE = 50          # wordsn

BP = 8                   # batch padded to one sublane tile
GP = 128                 # lane-aligned block per gate (H=20 lives in lanes [0, 20))
HP = 128                 # padded hidden width (one lane tile)
LP = 128                 # padded label width (lane-dense output store)


# ------------------------------- Pallas kernel -----------------------------------------
def lstm_fc_kernel(xg_ref,     # (T*BP, 4*GP) f32  fused emb@W_ih^T + bias, gate-scaled, time-major
                   whh_ref,    # (HP, 4*GP)   f32  W_hh^T (i/f/o cols pre-scaled by 0.5), rows>=H zero
                   wfc_ref,    # (HP, LP)     f32  W_fc^T, rows>=H and cols>=L zero
                   bfc_ref,    # (1, LP)      f32  b_fc, lanes>=L zero
                   out_ref,    # (T*BP, LP)   f32  logits (lane-dense), time-major, batch-padded
                   hs_scr,     # (T*BP, HP)   f32  VMEM scratch: hidden states for the FC head
                   *, T, BPAD, GATE):
    h = jnp.zeros((BPAD, HP), jnp.float32)
    c = jnp.zeros((BPAD, HP), jnp.float32)

    # Fully unrolled recurrence (T=8). Only the small (BP,HP)x(HP,4*GP) matmul + the
    # elementwise/EUP gate work sits on the serial h-dependency chain; every slice is
    # static and lane/sublane aligned. W_hh RHS streams from VMEM each step (not hoisted
    # into a 64-vreg value).
    for t in range(T):
        x_gates = xg_ref[pl.ds(t * BPAD, BPAD), :]                        # (BP, 4*GP)
        gates = x_gates + jnp.dot(h, whh_ref[...],
                                  preferred_element_type=jnp.float32)     # (BP, 4*GP)

        # i/f/o pre-activations are already scaled by 0.5 (folded into weights/bias),
        # so sigmoid(x) = 0.5*tanh(x/2) + 0.5 costs a single EUP tanh each.
        i_g = 0.5 * jnp.tanh(gates[:, 0 * GATE:1 * GATE]) + 0.5
        f_g = 0.5 * jnp.tanh(gates[:, 1 * GATE:2 * GATE]) + 0.5
        g_g = jnp.tanh(gates[:, 2 * GATE:3 * GATE])
        o_g = 0.5 * jnp.tanh(gates[:, 3 * GATE:4 * GATE]) + 0.5

        c = f_g * c + i_g * g_g                                           # (BP, HP)
        h = o_g * jnp.tanh(c)
        hs_scr[pl.ds(t * BPAD, BPAD), :] = h                              # off-chain vst

    # Deferred FC head: one matmul + one lane-dense store for all timesteps.
    out_ref[...] = (jnp.dot(hs_scr[...], wfc_ref[...],
                            preferred_element_type=jnp.float32)
                    + bfc_ref[...])                                       # (T*BP, LP)


# ------------------------------- wrapper -------------------------------------------------
@jax.jit
def lstm_forward(x_ids, params):
    """x_ids: (B, T) int32 token ids. Returns logits (B, T, L) float32."""
    emb_table, w_ih, w_hh, b_ih, b_hh, w_fc, b_fc = params
    B, T = x_ids.shape
    H = w_hh.shape[1]
    L = w_fc.shape[0]

    # Gate order [i, f, g, o]; i/f/o pre-activations are pre-scaled by 0.5 so the kernel
    # can use the single-tanh sigmoid identity. Pad lanes stay exactly zero (required:
    # they feed back through the recurrent matmul).
    gate_scale = (0.5, 0.5, 1.0, 0.5)

    def pack_gates(w_t):                                                   # (K, 4H) -> (K, 4*GP)
        K = w_t.shape[0]
        out = jnp.zeros((K, 4 * GP), jnp.float32)
        for k in range(4):
            out = out.at[:, k * GP:k * GP + H].set(gate_scale[k] * w_t[:, k * H:(k + 1) * H])
        return out

    # Fused embedding + input projection + bias lookup table: (V, 4*GP).
    xg_table = pack_gates(emb_table.astype(jnp.float32) @ w_ih.T
                          + (b_ih + b_hh).reshape(1, 4 * H))

    # Gather directly into the kernel's time-major, batch-padded flat layout.
    ids_tm = jnp.zeros((T, BP), x_ids.dtype).at[:, :B].set(x_ids.T)        # (T, BP)
    xg = jnp.take(xg_table, ids_tm.reshape(T * BP), axis=0)               # (T*BP, 4*GP)

    whh_p = jnp.zeros((HP, 4 * GP), jnp.float32).at[:H, :].set(pack_gates(w_hh.T))
    wfc_p = jnp.zeros((HP, LP), jnp.float32).at[:H, :L].set(w_fc.T)       # (HP, LP)
    bfc_p = jnp.zeros((1, LP), jnp.float32).at[0, :L].set(b_fc)           # (1, LP)

    out_flat = pl.pallas_call(
        functools.partial(lstm_fc_kernel, T=T, BPAD=BP, GATE=GP),
        out_shape=jax.ShapeDtypeStruct((T * BP, LP), jnp.float32),
        in_specs=[pl.BlockSpec(memory_space=pltpu.MemorySpace.VMEM)] * 4,
        out_specs=pl.BlockSpec(memory_space=pltpu.MemorySpace.VMEM),
        scratch_shapes=[
            pltpu.VMEM((T * BP, HP), jnp.float32),    # hidden states for the FC head
        ],
    )(xg, whh_p, wfc_p, bfc_p)

    # Drop padded batch rows / padded label lanes; return batch-first like PyTorch.
    out = out_flat.reshape(T, BP, LP)[:, :B, :L]                          # (T, B, L)
    return jnp.transpose(out, (1, 0, 2))                                  # (B, T, L)


# ---------------------------- pure-JAX reference ----------------------------------------
def lstm_forward_ref(x_ids, params):
    emb_table, w_ih, w_hh, b_ih, b_hh, w_fc, b_fc = params
    B, T = x_ids.shape
    H = w_hh.shape[1]
    emb = jnp.take(emb_table, x_ids, axis=0)          # (B, T, E)

    def step(carry, x_t):
        h, c = carry
        gates = x_t @ w_ih.T + h @ w_hh.T + b_ih + b_hh
        i_g = jax.nn.sigmoid(gates[:, 0 * H:1 * H])
        f_g = jax.nn.sigmoid(gates[:, 1 * H:2 * H])
        g_g = jnp.tanh(gates[:, 2 * H:3 * H])
        o_g = jax.nn.sigmoid(gates[:, 3 * H:4 * H])
        c_new = f_g * c + i_g * g_g
        h_new = o_g * jnp.tanh(c_new)
        return (h_new, c_new), h_new

    h0 = jnp.zeros((B, H), jnp.float32)
    c0 = jnp.zeros((B, H), jnp.float32)
    _, hs = lax.scan(step, (h0, c0), jnp.transpose(emb, (1, 0, 2)))  # (T, B, H)
    hs = jnp.transpose(hs, (1, 0, 2))                                # (B, T, H)
    logits = hs.reshape(-1, H) @ w_fc.T + b_fc
    return logits.reshape(B, T, -1)


# ------------------------------------ main ----------------------------------------------
def make_params(key):
    E, H, L, V = WORD_EMBED_SIZE, LSTM_HIDDEN_SIZE, LABEL_SIZE, VOCAB_SIZE
    ks = jax.random.split(key, 7)
    k_lstm = 1.0 / jnp.sqrt(H)
    k_fc = 1.0 / jnp.sqrt(H)
    emb_table = jax.random.normal(ks[0], (V, E), jnp.float32)                       # nn.Embedding ~ N(0,1)
    w_ih = jax.random.uniform(ks[1], (4 * H, E), jnp.float32, -k_lstm, k_lstm)      # weight_ih_l0
    w_hh = jax.random.uniform(ks[2], (4 * H, H), jnp.float32, -k_lstm, k_lstm)      # weight_hh_l0
    b_ih = jax.random.uniform(ks[3], (4 * H,), jnp.float32, -k_lstm, k_lstm)        # bias_ih_l0
    b_hh = jax.random.uniform(ks[4], (4 * H,), jnp.float32, -k_lstm, k_lstm)        # bias_hh_l0
    w_fc = jax.random.uniform(ks[5], (L, H), jnp.float32, -k_fc, k_fc)              # fc.weight
    b_fc = jax.random.uniform(ks[6], (L,), jnp.float32, -k_fc, k_fc)                # fc.bias
    return (emb_table, w_ih, w_hh, b_ih, b_hh, w_fc, b_fc)


if __name__ == "__main__":
    key = jax.random.PRNGKey(0)
    k_params, k_ids = jax.random.split(key)
    params = make_params(k_params)

    x_ids = jax.random.randint(k_ids, (BATCH_SIZE, SEQ_LEN), 0, VOCAB_SIZE, dtype=jnp.int32)

    logits = lstm_forward(x_ids, params)
    logits = jax.block_until_ready(logits)

    ref = jax.block_until_ready(lstm_forward_ref(x_ids, params))

    assert logits.shape == (BATCH_SIZE, SEQ_LEN, LABEL_SIZE), logits.shape
    err = float(jnp.max(jnp.abs(logits - ref)))
    assert jnp.allclose(logits, ref, atol=1e-4, rtol=1e-4), err

    print("KERNEL_OK")
</pallas_src>

<mosaic_0001>
module attributes {stable_mosaic.version = 11 : i64} {
  func.func @lstm_fc_kernel(%arg0: memref<64x512xf32, #tpu.memory_space<vmem>>, %arg1: memref<128x512xf32, #tpu.memory_space<vmem>>, %arg2: memref<128x128xf32, #tpu.memory_space<vmem>>, %arg3: memref<1x128xf32, #tpu.memory_space<vmem>>, %arg4: memref<64x128xf32, #tpu.memory_space<vmem>>, %arg5: memref<64x128xf32, #tpu.memory_space<vmem>>) attributes {dimension_semantics = [], scalar_prefetch = 0 : i64, scratch_operands = 1 : i64, tpu.core_type = #tpu.core_type<tc>} {
    %cst = arith.constant 0.000000e+00 : f32
    %0 = vector.broadcast %cst : f32 to vector<8x128xf32>
    %cst_0 = arith.constant 0.000000e+00 : f32
    %1 = vector.broadcast %cst_0 : f32 to vector<8x128xf32>
    %c0 = arith.constant 0 : index
    %c0_1 = arith.constant 0 : index
    %2 = vector.load %arg0[%c0, %c0_1] : memref<64x512xf32, #tpu.memory_space<vmem>>, vector<8x512xf32>
    %c0_2 = arith.constant 0 : index
    %c0_3 = arith.constant 0 : index
    %3 = vector.load %arg1[%c0_2, %c0_3] : memref<128x512xf32, #tpu.memory_space<vmem>>, vector<128x512xf32>
    %cst_4 = arith.constant dense<0.000000e+00> : vector<8x512xf32>
    %4 = tpu.matmul %0, %3, %cst_4 {dimension_numbers = #tpu.dot_dimension_numbers<[1], [0], [0], [1], [0, 0, 1, 1], [], []>} : vector<8x128xf32>, vector<128x512xf32>, vector<8x512xf32> -> vector<8x512xf32>
    %5 = arith.addf %2, %4 : vector<8x512xf32>
    %6 = vector.extract_strided_slice %5 {offsets = [0, 0], sizes = [8, 128], strides = [1, 1]} : vector<8x512xf32> to vector<8x128xf32>
    %7 = math.tanh %6 : vector<8x128xf32>
    %cst_5 = arith.constant 5.000000e-01 : f32
    %8 = vector.broadcast %cst_5 : f32 to vector<8x128xf32>
    %9 = arith.mulf %8, %7 : vector<8x128xf32>
    %cst_6 = arith.constant 5.000000e-01 : f32
    %10 = vector.broadcast %cst_6 : f32 to vector<8x128xf32>
    %11 = arith.addf %9, %10 : vector<8x128xf32>
    %12 = vector.extract_strided_slice %5 {offsets = [0, 128], sizes = [8, 128], strides = [1, 1]} : vector<8x512xf32> to vector<8x128xf32>
    %13 = math.tanh %12 : vector<8x128xf32>
    %cst_7 = arith.constant 5.000000e-01 : f32
    %14 = vector.broadcast %cst_7 : f32 to vector<8x128xf32>
    %15 = arith.mulf %14, %13 : vector<8x128xf32>
    %cst_8 = arith.constant 5.000000e-01 : f32
    %16 = vector.broadcast %cst_8 : f32 to vector<8x128xf32>
    %17 = arith.addf %15, %16 : vector<8x128xf32>
    %18 = vector.extract_strided_slice %5 {offsets = [0, 256], sizes = [8, 128], strides = [1, 1]} : vector<8x512xf32> to vector<8x128xf32>
    %19 = math.tanh %18 : vector<8x128xf32>
    %20 = vector.extract_strided_slice %5 {offsets = [0, 384], sizes = [8, 128], strides = [1, 1]} : vector<8x512xf32> to vector<8x128xf32>
    %21 = math.tanh %20 : vector<8x128xf32>
    %cst_9 = arith.constant 5.000000e-01 : f32
    %22 = vector.broadcast %cst_9 : f32 to vector<8x128xf32>
    %23 = arith.mulf %22, %21 : vector<8x128xf32>
    %cst_10 = arith.constant 5.000000e-01 : f32
    %24 = vector.broadcast %cst_10 : f32 to vector<8x128xf32>
    %25 = arith.addf %23, %24 : vector<8x128xf32>
    %26 = arith.mulf %17, %1 : vector<8x128xf32>
    %27 = arith.mulf %11, %19 : vector<8x128xf32>
    %28 = arith.addf %26, %27 : vector<8x128xf32>
    %29 = math.tanh %28 : vector<8x128xf32>
    %30 = arith.mulf %25, %29 : vector<8x128xf32>
    %c0_11 = arith.constant 0 : index
    %c0_12 = arith.constant 0 : index
    %31 = vector.load %arg5[%c0_11, %c0_12] : memref<64x128xf32, #tpu.memory_space<vmem>>, vector<8x128xf32>
    tpu.vector_store %arg5[%c0_11, %c0_12], %30 {strides = array<i32>} : memref<64x128xf32, #tpu.memory_space<vmem>>, vector<8x128xf32>,
    %c8 = arith.constant 8 : index
    %c0_13 = arith.constant 0 : index
    %32 = vector.load %arg0[%c8, %c0_13] : memref<64x512xf32, #tpu.memory_space<vmem>>, vector<8x512xf32>
    %c0_14 = arith.constant 0 : index
    %c0_15 = arith.constant 0 : index
    %33 = vector.load %arg1[%c0_14, %c0_15] : memref<128x512xf32, #tpu.memory_space<vmem>>, vector<128x512xf32>
    %cst_16 = arith.constant dense<0.000000e+00> : vector<8x512xf32>
    %34 = tpu.matmul %30, %33, %cst_16 {dimension_numbers = #tpu.dot_dimension_numbers<[1], [0], [0], [1], [0, 0, 1, 1], [], []>} : vector<8x128xf32>, vector<128x512xf32>, vector<8x512xf32> -> vector<8x512xf32>
    %35 = arith.addf %32, %34 : vector<8x512xf32>
    %36 = vector.extract_strided_slice %35 {offsets = [0, 0], sizes = [8, 128], strides = [1, 1]} : vector<8x512xf32> to vector<8x128xf32>
    %37 = math.tanh %36 : vector<8x128xf32>
    %cst_17 = arith.constant 5.000000e-01 : f32
    %38 = vector.broadcast %cst_17 : f32 to vector<8x128xf32>
    %39 = arith.mulf %38, %37 : vector<8x128xf32>
    %cst_18 = arith.constant 5.000000e-01 : f32
    %40 = vector.broadcast %cst_18 : f32 to vector<8x128xf32>
    %41 = arith.addf %39, %40 : vector<8x128xf32>
    %42 = vector.extract_strided_slice %35 {offsets = [0, 128], sizes = [8, 128], strides = [1, 1]} : vector<8x512xf32> to vector<8x128xf32>
    %43 = math.tanh %42 : vector<8x128xf32>
    %cst_19 = arith.constant 5.000000e-01 : f32
    %44 = vector.broadcast %cst_19 : f32 to vector<8x128xf32>
    %45 = arith.mulf %44, %43 : vector<8x128xf32>
    %cst_20 = arith.constant 5.000000e-01 : f32
    %46 = vector.broadcast %cst_20 : f32 to vector<8x128xf32>
    %47 = arith.addf %45, %46 : vector<8x128xf32>
    %48 = vector.extract_strided_slice %35 {offsets = [0, 256], sizes = [8, 128], strides = [1, 1]} : vector<8x512xf32> to vector<8x128xf32>
    %49 = math.tanh %48 : vector<8x128xf32>
    %50 = vector.extract_strided_slice %35 {offsets = [0, 384], sizes = [8, 128], strides = [1, 1]} : vector<8x512xf32> to vector<8x128xf32>
    %51 = math.tanh %50 : vector<8x128xf32>
    %cst_21 = arith.constant 5.000000e-01 : f32
    %52 = vector.broadcast %cst_21 : f32 to vector<8x128xf32>
    %53 = arith.mulf %52, %51 : vector<8x128xf32>
    %cst_22 = arith.constant 5.000000e-01 : f32
    %54 = vector.broadcast %cst_22 : f32 to vector<8x128xf32>
    %55 = arith.addf %53, %54 : vector<8x128xf32>
    %56 = arith.mulf %47, %28 : vector<8x128xf32>
    %57 = arith.mulf %41, %49 : vector<8x128xf32>
    %58 = arith.addf %56, %57 : vector<8x128xf32>
    %59 = math.tanh %58 : vector<8x128xf32>
    %60 = arith.mulf %55, %59 : vector<8x128xf32>
    %c8_23 = arith.constant 8 : index
    %c0_24 = arith.constant 0 : index
    %61 = vector.load %arg5[%c8_23, %c0_24] : memref<64x128xf32, #tpu.memory_space<vmem>>, vector<8x128xf32>
    tpu.vector_store %arg5[%c8_23, %c0_24], %60 {strides = array<i32>} : memref<64x128xf32, #tpu.memory_space<vmem>>, vector<8x128xf32>,
    %c16 = arith.constant 16 : index
    %c0_25 = arith.constant 0 : index
    %62 = vector.load %arg0[%c16, %c0_25] : memref<64x512xf32, #tpu.memory_space<vmem>>, vector<8x512xf32>
    %c0_26 = arith.constant 0 : index
    %c0_27 = arith.constant 0 : index
    %63 = vector.load %arg1[%c0_26, %c0_27] : memref<128x512xf32, #tpu.memory_space<vmem>>, vector<128x512xf32>
    %cst_28 = arith.constant dense<0.000000e+00> : vector<8x512xf32>
    %64 = tpu.matmul %60, %63, %cst_28 {dimension_numbers = #tpu.dot_dimension_numbers<[1], [0], [0], [1], [0, 0, 1, 1], [], []>} : vector<8x128xf32>, vector<128x512xf32>, vector<8x512xf32> -> vector<8x512xf32>
    %65 = arith.addf %62, %64 : vector<8x512xf32>
    %66 = vector.extract_strided_slice %65 {offsets = [0, 0], sizes = [8, 128], strides = [1, 1]} : vector<8x512xf32> to vector<8x128xf32>
    %67 = math.tanh %66 : vector<8x128xf32>
    %cst_29 = arith.constant 5.000000e-01 : f32
    %68 = vector.broadcast %cst_29 : f32 to vector<8x128xf32>
    %69 = arith.mulf %68, %67 : vector<8x128xf32>
    %cst_30 = arith.constant 5.000000e-01 : f32
    %70 = vector.broadcast %cst_30 : f32 to vector<8x128xf32>
    %71 = arith.addf %69, %70 : vector<8x128xf32>
    %72 = vector.extract_strided_slice %65 {offsets = [0, 128], sizes = [8, 128], strides = [1, 1]} : vector<8x512xf32> to vector<8x128xf32>
    %73 = math.tanh %72 : vector<8x128xf32>
    %cst_31 = arith.constant 5.000000e-01 : f32
    %74 = vector.broadcast %cst_31 : f32 to vector<8x128xf32>
    %75 = arith.mulf %74, %73 : vector<8x128xf32>
    %cst_32 = arith.constant 5.000000e-01 : f32
    %76 = vector.broadcast %cst_32 : f32 to vector<8x128xf32>
    %77 = arith.addf %75, %76 : vector<8x128xf32>
    %78 = vector.extract_strided_slice %65 {offsets = [0, 256], sizes = [8, 128], strides = [1, 1]} : vector<8x512xf32> to vector<8x128xf32>
    %79 = math.tanh %78 : vector<8x128xf32>
    %80 = vector.extract_strided_slice %65 {offsets = [0, 384], sizes = [8, 128], strides = [1, 1]} : vector<8x512xf32> to vector<8x128xf32>
    %81 = math.tanh %80 : vector<8x128xf32>
    %cst_33 = arith.constant 5.000000e-01 : f32
    %82 = vector.broadcast %cst_33 : f32 to vector<8x128xf32>
    %83 = arith.mulf %82, %81 : vector<8x128xf32>
    %cst_34 = arith.constant 5.000000e-01 : f32
    %84 = vector.broadcast %cst_34 : f32 to vector<8x128xf32>
    %85 = arith.addf %83, %84 : vector<8x128xf32>
    %86 = arith.mulf %77, %58 : vector<8x128xf32>
    %87 = arith.mulf %71, %79 : vector<8x128xf32>
    %88 = arith.addf %86, %87 : vector<8x128xf32>
    %89 = math.tanh %88 : vector<8x128xf32>
    %90 = arith.mulf %85, %89 : vector<8x128xf32>
    %c16_35 = arith.constant 16 : index
    %c0_36 = arith.constant 0 : index
    %91 = vector.load %arg5[%c16_35, %c0_36] : memref<64x128xf32, #tpu.memory_space<vmem>>, vector<8x128xf32>
    tpu.vector_store %arg5[%c16_35, %c0_36], %90 {strides = array<i32>} : memref<64x128xf32, #tpu.memory_space<vmem>>, vector<8x128xf32>,
    %c24 = arith.constant 24 : index
    %c0_37 = arith.constant 0 : index
    %92 = vector.load %arg0[%c24, %c0_37] : memref<64x512xf32, #tpu.memory_space<vmem>>, vector<8x512xf32>
    %c0_38 = arith.constant 0 : index
    %c0_39 = arith.constant 0 : index
    %93 = vector.load %arg1[%c0_38, %c0_39] : memref<128x512xf32, #tpu.memory_space<vmem>>, vector<128x512xf32>
    %cst_40 = arith.constant dense<0.000000e+00> : vector<8x512xf32>
    %94 = tpu.matmul %90, %93, %cst_40 {dimension_numbers = #tpu.dot_dimension_numbers<[1], [0], [0], [1], [0, 0, 1, 1], [], []>} : vector<8x128xf32>, vector<128x512xf32>, vector<8x512xf32> -> vector<8x512xf32>
    %95 = arith.addf %92, %94 : vector<8x512xf32>
    %96 = vector.extract_strided_slice %95 {offsets = [0, 0], sizes = [8, 128], strides = [1, 1]} : vector<8x512xf32> to vector<8x128xf32>
    %97 = math.tanh %96 : vector<8x128xf32>
    %cst_41 = arith.constant 5.000000e-01 : f32
    %98 = vector.broadcast %cst_41 : f32 to vector<8x128xf32>
    %99 = arith.mulf %98, %97 : vector<8x128xf32>
    %cst_42 = arith.constant 5.000000e-01 : f32
    %100 = vector.broadcast %cst_42 : f32 to vector<8x128xf32>
    %101 = arith.addf %99, %100 : vector<8x128xf32>
    %102 = vector.extract_strided_slice %95 {offsets = [0, 128], sizes = [8, 128], strides = [1, 1]} : vector<8x512xf32> to vector<8x128xf32>
    %103 = math.tanh %102 : vector<8x128xf32>
    %cst_43 = arith.constant 5.000000e-01 : f32
    %104 = vector.broadcast %cst_43 : f32 to vector<8x128xf32>
    %105 = arith.mulf %104, %103 : vector<8x128xf32>
    %cst_44 = arith.constant 5.000000e-01 : f32
    %106 = vector.broadcast %cst_44 : f32 to vector<8x128xf32>
    %107 = arith.addf %105, %106 : vector<8x128xf32>
    %108 = vector.extract_strided_slice %95 {offsets = [0, 256], sizes = [8, 128], strides = [1, 1]} : vector<8x512xf32> to vector<8x128xf32>
    %109 = math.tanh %108 : vector<8x128xf32>
    %110 = vector.extract_strided_slice %95 {offsets = [0, 384], sizes = [8, 128], strides = [1, 1]} : vector<8x512xf32> to vector<8x128xf32>
    %111 = math.tanh %110 : vector<8x128xf32>
    %cst_45 = arith.constant 5.000000e-01 : f32
    %112 = vector.broadcast %cst_45 : f32 to vector<8x128xf32>
    %113 = arith.mulf %112, %111 : vector<8x128xf32>
    %cst_46 = arith.constant 5.000000e-01 : f32
    %114 = vector.broadcast %cst_46 : f32 to vector<8x128xf32>
    %115 = arith.addf %113, %114 : vector<8x128xf32>
    %116 = arith.mulf %107, %88 : vector<8x128xf32>
    %117 = arith.mulf %101, %109 : vector<8x128xf32>
    %118 = arith.addf %116, %117 : vector<8x128xf32>
    %119 = math.tanh %118 : vector<8x128xf32>
    %120 = arith.mulf %115, %119 : vector<8x128xf32>
    %c24_47 = arith.constant 24 : index
    %c0_48 = arith.constant 0 : index
    %121 = vector.load %arg5[%c24_47, %c0_48] : memref<64x128xf32, #tpu.memory_space<vmem>>, vector<8x128xf32>
    tpu.vector_store %arg5[%c24_47, %c0_48], %120 {strides = array<i32>} : memref<64x128xf32, #tpu.memory_space<vmem>>, vector<8x128xf32>,
    %c32 = arith.constant 32 : index
    %c0_49 = arith.constant 0 : index
    %122 = vector.load %arg0[%c32, %c0_49] : memref<64x512xf32, #tpu.memory_space<vmem>>, vector<8x512xf32>
    %c0_50 = arith.constant 0 : index
    %c0_51 = arith.constant 0 : index
    %123 = vector.load %arg1[%c0_50, %c0_51] : memref<128x512xf32, #tpu.memory_space<vmem>>, vector<128x512xf32>
    %cst_52 = arith.constant dense<0.000000e+00> : vector<8x512xf32>
    %124 = tpu.matmul %120, %123, %cst_52 {dimension_numbers = #tpu.dot_dimension_numbers<[1], [0], [0], [1], [0, 0, 1, 1], [], []>} : vector<8x128xf32>, vector<128x512xf32>, vector<8x512xf32> -> vector<8x512xf32>
    %125 = arith.addf %122, %124 : vector<8x512xf32>
    %126 = vector.extract_strided_slice %125 {offsets = [0, 0], sizes = [8, 128], strides = [1, 1]} : vector<8x512xf32> to vector<8x128xf32>
    %127 = math.tanh %126 : vector<8x128xf32>
    %cst_53 = arith.constant 5.000000e-01 : f32
    %128 = vector.broadcast %cst_53 : f32 to vector<8x128xf32>
    %129 = arith.mulf %128, %127 : vector<8x128xf32>
    %cst_54 = arith.constant 5.000000e-01 : f32
    %130 = vector.broadcast %cst_54 : f32 to vector<8x128xf32>
    %131 = arith.addf %129, %130 : vector<8x128xf32>
    %132 = vector.extract_strided_slice %125 {offsets = [0, 128], sizes = [8, 128], strides = [1, 1]} : vector<8x512xf32> to vector<8x128xf32>
    %133 = math.tanh %132 : vector<8x128xf32>
    %cst_55 = arith.constant 5.000000e-01 : f32
    %134 = vector.broadcast %cst_55 : f32 to vector<8x128xf32>
    %135 = arith.mulf %134, %133 : vector<8x128xf32>
    %cst_56 = arith.constant 5.000000e-01 : f32
    %136 = vector.broadcast %cst_56 : f32 to vector<8x128xf32>
    %137 = arith.addf %135, %136 : vector<8x128xf32>
    %138 = vector.extract_strided_slice %125 {offsets = [0, 256], sizes = [8, 128], strides = [1, 1]} : vector<8x512xf32> to vector<8x128xf32>
    %139 = math.tanh %138 : vector<8x128xf32>
    %140 = vector.extract_strided_slice %125 {offsets = [0, 384], sizes = [8, 128], strides = [1, 1]} : vector<8x512xf32> to vector<8x128xf32>
    %141 = math.tanh %140 : vector<8x128xf32>
    %cst_57 = arith.constant 5.000000e-01 : f32
    %142 = vector.broadcast %cst_57 : f32 to vector<8x128xf32>
    %143 = arith.mulf %142, %141 : vector<8x128xf32>
    %cst_58 = arith.constant 5.000000e-01 : f32
    %144 = vector.broadcast %cst_58 : f32 to vector<8x128xf32>
    %145 = arith.addf %143, %144 : vector<8x128xf32>
    %146 = arith.mulf %137, %118 : vector<8x128xf32>
    %147 = arith.mulf %131, %139 : vector<8x128xf32>
    %148 = arith.addf %146, %147 : vector<8x128xf32>
    %149 = math.tanh %148 : vector<8x128xf32>
    %150 = arith.mulf %145, %149 : vector<8x128xf32>
    %c32_59 = arith.constant 32 : index
    %c0_60 = arith.constant 0 : index
    %151 = vector.load %arg5[%c32_59, %c0_60] : memref<64x128xf32, #tpu.memory_space<vmem>>, vector<8x128xf32>
    tpu.vector_store %arg5[%c32_59, %c0_60], %150 {strides = array<i32>} : memref<64x128xf32, #tpu.memory_space<vmem>>, vector<8x128xf32>,
    %c40 = arith.constant 40 : index
    %c0_61 = arith.constant 0 : index
    %152 = vector.load %arg0[%c40, %c0_61] : memref<64x512xf32, #tpu.memory_space<vmem>>, vector<8x512xf32>
    %c0_62 = arith.constant 0 : index
    %c0_63 = arith.constant 0 : index
    %153 = vector.load %arg1[%c0_62, %c0_63] : memref<128x512xf32, #tpu.memory_space<vmem>>, vector<128x512xf32>
    %cst_64 = arith.constant dense<0.000000e+00> : vector<8x512xf32>
    %154 = tpu.matmul %150, %153, %cst_64 {dimension_numbers = #tpu.dot_dimension_numbers<[1], [0], [0], [1], [0, 0, 1, 1], [], []>} : vector<8x128xf32>, vector<128x512xf32>, vector<8x512xf32> -> vector<8x512xf32>
    %155 = arith.addf %152, %154 : vector<8x512xf32>
    %156 = vector.extract_strided_slice %155 {offsets = [0, 0], sizes = [8, 128], strides = [1, 1]} : vector<8x512xf32> to vector<8x128xf32>
    %157 = math.tanh %156 : vector<8x128xf32>
    %cst_65 = arith.constant 5.000000e-01 : f32
    %158 = vector.broadcast %cst_65 : f32 to vector<8x128xf32>
    %159 = arith.mulf %158, %157 : vector<8x128xf32>
    %cst_66 = arith.constant 5.000000e-01 : f32
    %160 = vector.broadcast %cst_66 : f32 to vector<8x128xf32>
    %161 = arith.addf %159, %160 : vector<8x128xf32>
    %162 = vector.extract_strided_slice %155 {offsets = [0, 128], sizes = [8, 128], strides = [1, 1]} : vector<8x512xf32> to vector<8x128xf32>
    %163 = math.tanh %162 : vector<8x128xf32>
    %cst_67 = arith.constant 5.000000e-01 : f32
    %164 = vector.broadcast %cst_67 : f32 to vector<8x128xf32>
    %165 = arith.mulf %164, %163 : vector<8x128xf32>
    %cst_68 = arith.constant 5.000000e-01 : f32
    %166 = vector.broadcast %cst_68 : f32 to vector<8x128xf32>
    %167 = arith.addf %165, %166 : vector<8x128xf32>
    %168 = vector.extract_strided_slice %155 {offsets = [0, 256], sizes = [8, 128], strides = [1, 1]} : vector<8x512xf32> to vector<8x128xf32>
    %169 = math.tanh %168 : vector<8x128xf32>
    %170 = vector.extract_strided_slice %155 {offsets = [0, 384], sizes = [8, 128], strides = [1, 1]} : vector<8x512xf32> to vector<8x128xf32>
    %171 = math.tanh %170 : vector<8x128xf32>
    %cst_69 = arith.constant 5.000000e-01 : f32
    %172 = vector.broadcast %cst_69 : f32 to vector<8x128xf32>
    %173 = arith.mulf %172, %171 : vector<8x128xf32>
    %cst_70 = arith.constant 5.000000e-01 : f32
    %174 = vector.broadcast %cst_70 : f32 to vector<8x128xf32>
    %175 = arith.addf %173, %174 : vector<8x128xf32>
    %176 = arith.mulf %167, %148 : vector<8x128xf32>
    %177 = arith.mulf %161, %169 : vector<8x128xf32>
    %178 = arith.addf %176, %177 : vector<8x128xf32>
    %179 = math.tanh %178 : vector<8x128xf32>
    %180 = arith.mulf %175, %179 : vector<8x128xf32>
    %c40_71 = arith.constant 40 : index
    %c0_72 = arith.constant 0 : index
    %181 = vector.load %arg5[%c40_71, %c0_72] : memref<64x128xf32, #tpu.memory_space<vmem>>, vector<8x128xf32>
    tpu.vector_store %arg5[%c40_71, %c0_72], %180 {strides = array<i32>} : memref<64x128xf32, #tpu.memory_space<vmem>>, vector<8x128xf32>,
    %c48 = arith.constant 48 : index
    %c0_73 = arith.constant 0 : index
    %182 = vector.load %arg0[%c48, %c0_73] : memref<64x512xf32, #tpu.memory_space<vmem>>, vector<8x512xf32>
    %c0_74 = arith.constant 0 : index
    %c0_75 = arith.constant 0 : index
    %183 = vector.load %arg1[%c0_74, %c0_75] : memref<128x512xf32, #tpu.memory_space<vmem>>, vector<128x512xf32>
    %cst_76 = arith.constant dense<0.000000e+00> : vector<8x512xf32>
    %184 = tpu.matmul %180, %183, %cst_76 {dimension_numbers = #tpu.dot_dimension_numbers<[1], [0], [0], [1], [0, 0, 1, 1], [], []>} : vector<8x128xf32>, vector<128x512xf32>, vector<8x512xf32> -> vector<8x512xf32>
    %185 = arith.addf %182, %184 : vector<8x512xf32>
    %186 = vector.extract_strided_slice %185 {offsets = [0, 0], sizes = [8, 128], strides = [1, 1]} : vector<8x512xf32> to vector<8x128xf32>
    %187 = math.tanh %186 : vector<8x128xf32>
    %cst_77 = arith.constant 5.000000e-01 : f32
    %188 = vector.broadcast %cst_77 : f32 to vector<8x128xf32>
    %189 = arith.mulf %188, %187 : vector<8x128xf32>
    %cst_78 = arith.constant 5.000000e-01 : f32
    %190 = vector.broadcast %cst_78 : f32 to vector<8x128xf32>
    %191 = arith.addf %189, %190 : vector<8x128xf32>
    %192 = vector.extract_strided_slice %185 {offsets = [0, 128], sizes = [8, 128], strides = [1, 1]} : vector<8x512xf32> to vector<8x128xf32>
    %193 = math.tanh %192 : vector<8x128xf32>
    %cst_79 = arith.constant 5.000000e-01 : f32
    %194 = vector.broadcast %cst_79 : f32 to vector<8x128xf32>
    %195 = arith.mulf %194, %193 : vector<8x128xf32>
    %cst_80 = arith.constant 5.000000e-01 : f32
    %196 = vector.broadcast %cst_80 : f32 to vector<8x128xf32>
    %197 = arith.addf %195, %196 : vector<8x128xf32>
    %198 = vector.extract_strided_slice %185 {offsets = [0, 256], sizes = [8, 128], strides = [1, 1]} : vector<8x512xf32> to vector<8x128xf32>
    %199 = math.tanh %198 : vector<8x128xf32>
    %200 = vector.extract_strided_slice %185 {offsets = [0, 384], sizes = [8, 128], strides = [1, 1]} : vector<8x512xf32> to vector<8x128xf32>
    %201 = math.tanh %200 : vector<8x128xf32>
    %cst_81 = arith.constant 5.000000e-01 : f32
    %202 = vector.broadcast %cst_81 : f32 to vector<8x128xf32>
    %203 = arith.mulf %202, %201 : vector<8x128xf32>
    %cst_82 = arith.constant 5.000000e-01 : f32
    %204 = vector.broadcast %cst_82 : f32 to vector<8x128xf32>
    %205 = arith.addf %203, %204 : vector<8x128xf32>
    %206 = arith.mulf %197, %178 : vector<8x128xf32>
    %207 = arith.mulf %191, %199 : vector<8x128xf32>
    %208 = arith.addf %206, %207 : vector<8x128xf32>
    %209 = math.tanh %208 : vector<8x128xf32>
    %210 = arith.mulf %205, %209 : vector<8x128xf32>
    %c48_83 = arith.constant 48 : index
    %c0_84 = arith.constant 0 : index
    %211 = vector.load %arg5[%c48_83, %c0_84] : memref<64x128xf32, #tpu.memory_space<vmem>>, vector<8x128xf32>
    tpu.vector_store %arg5[%c48_83, %c0_84], %210 {strides = array<i32>} : memref<64x128xf32, #tpu.memory_space<vmem>>, vector<8x128xf32>,
    %c56 = arith.constant 56 : index
    %c0_85 = arith.constant 0 : index
    %212 = vector.load %arg0[%c56, %c0_85] : memref<64x512xf32, #tpu.memory_space<vmem>>, vector<8x512xf32>
    %c0_86 = arith.constant 0 : index
    %c0_87 = arith.constant 0 : index
    %213 = vector.load %arg1[%c0_86, %c0_87] : memref<128x512xf32, #tpu.memory_space<vmem>>, vector<128x512xf32>
    %cst_88 = arith.constant dense<0.000000e+00> : vector<8x512xf32>
    %214 = tpu.matmul %210, %213, %cst_88 {dimension_numbers = #tpu.dot_dimension_numbers<[1], [0], [0], [1], [0, 0, 1, 1], [], []>} : vector<8x128xf32>, vector<128x512xf32>, vector<8x512xf32> -> vector<8x512xf32>
    %215 = arith.addf %212, %214 : vector<8x512xf32>
    %216 = vector.extract_strided_slice %215 {offsets = [0, 0], sizes = [8, 128], strides = [1, 1]} : vector<8x512xf32> to vector<8x128xf32>
    %217 = math.tanh %216 : vector<8x128xf32>
    %cst_89 = arith.constant 5.000000e-01 : f32
    %218 = vector.broadcast %cst_89 : f32 to vector<8x128xf32>
    %219 = arith.mulf %218, %217 : vector<8x128xf32>
    %cst_90 = arith.constant 5.000000e-01 : f32
    %220 = vector.broadcast %cst_90 : f32 to vector<8x128xf32>
    %221 = arith.addf %219, %220 : vector<8x128xf32>
    %222 = vector.extract_strided_slice %215 {offsets = [0, 128], sizes = [8, 128], strides = [1, 1]} : vector<8x512xf32> to vector<8x128xf32>
    %223 = math.tanh %222 : vector<8x128xf32>
    %cst_91 = arith.constant 5.000000e-01 : f32
    %224 = vector.broadcast %cst_91 : f32 to vector<8x128xf32>
    %225 = arith.mulf %224, %223 : vector<8x128xf32>
    %cst_92 = arith.constant 5.000000e-01 : f32
    %226 = vector.broadcast %cst_92 : f32 to vector<8x128xf32>
    %227 = arith.addf %225, %226 : vector<8x128xf32>
    %228 = vector.extract_strided_slice %215 {offsets = [0, 256], sizes = [8, 128], strides = [1, 1]} : vector<8x512xf32> to vector<8x128xf32>
    %229 = math.tanh %228 : vector<8x128xf32>
    %230 = vector.extract_strided_slice %215 {offsets = [0, 384], sizes = [8, 128], strides = [1, 1]} : vector<8x512xf32> to vector<8x128xf32>
    %231 = math.tanh %230 : vector<8x128xf32>
    %cst_93 = arith.constant 5.000000e-01 : f32
    %232 = vector.broadcast %cst_93 : f32 to vector<8x128xf32>
    %233 = arith.mulf %232, %231 : vector<8x128xf32>
    %cst_94 = arith.constant 5.000000e-01 : f32
    %234 = vector.broadcast %cst_94 : f32 to vector<8x128xf32>
    %235 = arith.addf %233, %234 : vector<8x128xf32>
    %236 = arith.mulf %227, %208 : vector<8x128xf32>
    %237 = arith.mulf %221, %229 : vector<8x128xf32>
    %238 = arith.addf %236, %237 : vector<8x128xf32>
    %239 = math.tanh %238 : vector<8x128xf32>
    %240 = arith.mulf %235, %239 : vector<8x128xf32>
    %c56_95 = arith.constant 56 : index
    %c0_96 = arith.constant 0 : index
    %241 = vector.load %arg5[%c56_95, %c0_96] : memref<64x128xf32, #tpu.memory_space<vmem>>, vector<8x128xf32>
    tpu.vector_store %arg5[%c56_95, %c0_96], %240 {strides = array<i32>} : memref<64x128xf32, #tpu.memory_space<vmem>>, vector<8x128xf32>,
    %c0_97 = arith.constant 0 : index
    %c0_98 = arith.constant 0 : index
    %242 = vector.load %arg5[%c0_97, %c0_98] : memref<64x128xf32, #tpu.memory_space<vmem>>, vector<64x128xf32>
    %c0_99 = arith.constant 0 : index
    %c0_100 = arith.constant 0 : index
    %243 = vector.load %arg2[%c0_99, %c0_100] : memref<128x128xf32, #tpu.memory_space<vmem>>, vector<128x128xf32>
    %cst_101 = arith.constant dense<0.000000e+00> : vector<64x128xf32>
    %244 = tpu.matmul %242, %243, %cst_101 {dimension_numbers = #tpu.dot_dimension_numbers<[1], [0], [0], [1], [0, 0, 1, 1], [], []>} : vector<64x128xf32>, vector<128x128xf32>, vector<64x128xf32> -> vector<64x128xf32>
    %c0_102 = arith.constant 0 : index
    %c0_103 = arith.constant 0 : index
    %245 = vector.load %arg3[%c0_102, %c0_103] : memref<1x128xf32, #tpu.memory_space<vmem>>, vector<1x128xf32>
    %246 = vector.broadcast %245 : vector<1x128xf32> to vector<64x128xf32>
    %247 = arith.addf %244, %246 : vector<64x128xf32>
    %c0_104 = arith.constant 0 : index
    %c0_105 = arith.constant 0 : index
    %248 = vector.load %arg4[%c0_104, %c0_105] : memref<64x128xf32, #tpu.memory_space<vmem>>, vector<64x128xf32>
    tpu.vector_store %arg4[%c0_104, %c0_105], %247 {strides = array<i32>} : memref<64x128xf32, #tpu.memory_space<vmem>>, vector<64x128xf32>,
    return
  }
}

</mosaic_0001>

<bundles_post_ra>
// kernel: lstm_forward.1
= control target key start
LH: loop header
LB: loop body
LE: loop exit
PB: predicated region body
PF: predicated region fallthrough
CT: control target
= control target key end

     0   :  { %v2699_v3 = vmov 0.0   ;;  %s3775_s1 = inlined_call_operand.vmem [shape: f32[128,512], index: 1, kind: input, shape index: {}]   ;;  %s3776_s0 = inlined_call_operand.vmem [shape: f32[64,512], index: 0, kind: input, shape index: {}]   ;;  %s3777_s2 = inlined_call_operand.vmem [shape: f32[128,128], index: 2, kind: input, shape index: {}]   ;;  %s3778_s3 = inlined_call_operand.vmem [shape: f32[1,128], index: 3, kind: input, shape index: {}]   ;;  %s3779_s4 = inlined_call_operand.vmem [shape: f32[64,128], index: 4, kind: output, shape index: {}]  }
   0x1   :  { %v22_v0 = vld [vmem:[%s3775_s1 + $0x8] sm:$0xff]  ;;  %v21_v2 = vld [vmem:[%s3775_s1] sm:$0xff]  ;;  %149 = vmatprep.mubr.f32.mxu1 %v2699_v3  ;;  %379 = vmatprep.mubr.f32.mxu0 %v2699_v3  ;;  %v24_v48 = vld [vmem:[%s3775_s1 + $0x18] sm:$0xff] }
   0x2   :  { %v26_v1 = vld [vmem:[%s3775_s1 + $0x28] sm:$0xff]  ;;  %v25_v5 = vld [vmem:[%s3775_s1 + $0x20] sm:$0xff]  ;;  %v28_v49 = vld [vmem:[%s3775_s1 + $0x38] sm:$0xff] }
   0x3   :  { %v2736_v4 = vpack.c.bf16 %v26_v1, %v22_v0  ;;  %v30_v6 = vld [vmem:[%s3775_s1 + $0x48] sm:$0xff]  ;;  %v2747_v8 = vpack.c.bf16 %v25_v5, %v21_v2  ;;  %v29_v10 = vld [vmem:[%s3775_s1 + $0x40] sm:$0xff]  ;;  %v2890_v51 = vpack.c.bf16 %v28_v49, %v24_v48  ;;  %v23_v52 = vld [vmem:[%s3775_s1 + $0x10] sm:$0xff] }
   0x4   :  { %v34_v7 = vld [vmem:[%s3775_s1 + $0x68] sm:$0xff]  ;;  %v33_v11 = vld [vmem:[%s3775_s1 + $0x60] sm:$0xff]  ;;  %v27_v53 = vld [vmem:[%s3775_s1 + $0x30] sm:$0xff] }
   0x5   :  { %v2749_v9 = vpack.c.bf16 %v34_v7, %v30_v6  ;;  %v38_v12 = vld [vmem:[%s3775_s1 + $0x88] sm:$0xff]  ;;  %2075 = vmatprep.subr.bf16.mxu1 %v2736_v4  ;;  %2139 = vmatprep.subr.bf16.mxu0 %v2736_v4  ;;  %v2766_v14 = vpack.c.bf16 %v33_v11, %v29_v10  ;;  %v37_v16 = vld [vmem:[%s3775_s1 + $0x80] sm:$0xff]  ;;  %v32_v54 = vld [vmem:[%s3775_s1 + $0x58] sm:$0xff]  ;;  %v2906_v56 = vpack.c.bf16 %v27_v53, %v23_v52 }
   0x6   :  { %v42_v13 = vld [vmem:[%s3775_s1 + $0xa8] sm:$0xff]  ;;  %2077 = vmatpush1.bf16.msra.mxu1 %v2747_v8  ;;  %2141 = vmatpush1.bf16.msra.mxu0 %v2747_v8  ;;  %v41_v17 = vld [vmem:[%s3775_s1 + $0xa0] sm:$0xff]  ;;  %v36_v55 = vld [vmem:[%s3775_s1 + $0x78] sm:$0xff] }
   0x7   :  { %2079 = vmatprep.subr.bf16.mxu1 %v2749_v9  ;;  %v2770_v15 = vpack.c.bf16 %v42_v13, %v38_v12  ;;  %2143 = vmatprep.subr.bf16.mxu0 %v2749_v9  ;;  %v46_v18 = vld [vmem:[%s3775_s1 + $0xc8] sm:$0xff]  ;;  %v2786_v20 = vpack.c.bf16 %v41_v17, %v37_v16  ;;  %v45_v22 = vld [vmem:[%s3775_s1 + $0xc0] sm:$0xff]  ;;  %v2910_v57 = vpack.c.bf16 %v36_v55, %v32_v54  ;;  %v31_v58 = vld [vmem:[%s3775_s1 + $0x50] sm:$0xff] }
   0x8   :  { %v50_v19 = vld [vmem:[%s3775_s1 + $0xe8] sm:$0xff]  ;;  %v49_v23 = vld [vmem:[%s3775_s1 + $0xe0] sm:$0xff]  ;;  %v35_v59 = vld [vmem:[%s3775_s1 + $0x70] sm:$0xff] }
   0x9   :  { %v2790_v21 = vpack.c.bf16 %v50_v19, %v46_v18  ;;  %v54_v24 = vld [vmem:[%s3775_s1 + $0x108] sm:$0xff]  ;;  %v2806_v26 = vpack.c.bf16 %v49_v23, %v45_v22  ;;  %v53_v28 = vld [vmem:[%s3775_s1 + $0x100] sm:$0xff]  ;;  %v40_v60 = vld [vmem:[%s3775_s1 + $0x98] sm:$0xff]  ;;  %v2927_v62 = vpack.c.bf16 %v35_v59, %v31_v58 }
   0xa   :  { %2081 = vmatpush1.bf16.msra.mxu1 %v2766_v14  ;;  %2145 = vmatpush1.bf16.msra.mxu0 %v2766_v14  ;;  %v58_v25 = vld [vmem:[%s3775_s1 + $0x128] sm:$0xff]  ;;  %v57_v29 = vld [vmem:[%s3775_s1 + $0x120] sm:$0xff]  ;;  %v44_v61 = vld [vmem:[%s3775_s1 + $0xb8] sm:$0xff] }
   0xb   :  { %2083 = vmatprep.subr.bf16.mxu1 %v2770_v15  ;;  %2147 = vmatprep.subr.bf16.mxu0 %v2770_v15  ;;  %v2810_v27 = vpack.c.bf16 %v58_v25, %v54_v24  ;;  %v62_v30 = vld [vmem:[%s3775_s1 + $0x148] sm:$0xff]  ;;  %v2826_v32 = vpack.c.bf16 %v57_v29, %v53_v28  ;;  %v61_v34 = vld [vmem:[%s3775_s1 + $0x140] sm:$0xff]  ;;  %v2931_v63 = vpack.c.bf16 %v44_v61, %v40_v60  ;;  %v39_v0 = vld [vmem:[%s3775_s1 + $0x90] sm:$0xff] }
   0xc   :  { %v66_v31 = vld [vmem:[%s3775_s1 + $0x168] sm:$0xff]  ;;  %v65_v35 = vld [vmem:[%s3775_s1 + $0x160] sm:$0xff]  ;;  %v43_v1 = vld [vmem:[%s3775_s1 + $0xb0] sm:$0xff] }
   0xd   :  { %v2830_v33 = vpack.c.bf16 %v66_v31, %v62_v30  ;;  %v70_v36 = vld [vmem:[%s3775_s1 + $0x188] sm:$0xff]  ;;  %v2846_v38 = vpack.c.bf16 %v65_v35, %v61_v34  ;;  %v69_v40 = vld [vmem:[%s3775_s1 + $0x180] sm:$0xff]  ;;  %v48_v2 = vld [vmem:[%s3775_s1 + $0xd8] sm:$0xff]  ;;  %v2946_v6 = vpack.c.bf16 %v43_v1, %v39_v0 }
   0xe   :  { %2085 = vmatpush1.bf16.msra.mxu1 %v2786_v20  ;;  %2149 = vmatpush1.bf16.msra.mxu0 %v2786_v20  ;;  %v74_v37 = vld [vmem:[%s3775_s1 + $0x1a8] sm:$0xff]  ;;  %v73_v41 = vld [vmem:[%s3775_s1 + $0x1a0] sm:$0xff]  ;;  %v52_v5 = vld [vmem:[%s3775_s1 + $0xf8] sm:$0xff] }
   0xf   :  { %2087 = vmatprep.subr.bf16.mxu1 %v2790_v21  ;;  %2151 = vmatprep.subr.bf16.mxu0 %v2790_v21  ;;  %v2850_v39 = vpack.c.bf16 %v74_v37, %v70_v36  ;;  %v78_v42 = vld [vmem:[%s3775_s1 + $0x1c8] sm:$0xff]  ;;  %v2866_v44 = vpack.c.bf16 %v73_v41, %v69_v40  ;;  %v77_v46 = vld [vmem:[%s3775_s1 + $0x1c0] sm:$0xff]  ;;  %v2949_v7 = vpack.c.bf16 %v52_v5, %v48_v2  ;;  %v47_v10 = vld [vmem:[%s3775_s1 + $0xd0] sm:$0xff] }
  0x10   :  { %v82_v43 = vld [vmem:[%s3775_s1 + $0x1e8] sm:$0xff]  ;;  %v81_v47 = vld [vmem:[%s3775_s1 + $0x1e0] sm:$0xff]  ;;  %v51_v11 = vld [vmem:[%s3775_s1 + $0xf0] sm:$0xff] }
  0x11   :  { %v2870_v45 = vpack.c.bf16 %v82_v43, %v78_v42  ;;  %v2886_v50 = vpack.c.bf16 %v81_v47, %v77_v46  ;;  %v56_v12 = vld [vmem:[%s3775_s1 + $0x118] sm:$0xff]  ;;  %v2964_v16 = vpack.c.bf16 %v51_v11, %v47_v10  ;;  %v55_v18 = vld [vmem:[%s3775_s1 + $0x110] sm:$0xff]  ;;  %v18_v53 = vld [vmem:[%s3776_s0 + $0x8] sm:$0xff] }
  0x12   :  { %2089 = vmatpush1.bf16.msra.mxu1 %v2806_v26  ;;  %2153 = vmatpush1.bf16.msra.mxu0 %v2806_v26  ;;  %v60_v13 = vld [vmem:[%s3775_s1 + $0x138] sm:$0xff]  ;;  %v59_v19 = vld [vmem:[%s3775_s1 + $0x130] sm:$0xff]  ;;  %v17_v54 = vld [vmem:[%s3776_s0] sm:$0xff] }
  0x13   :  { %2091 = vmatprep.subr.bf16.mxu1 %v2810_v27  ;;  %2155 = vmatprep.subr.bf16.mxu0 %v2810_v27  ;;  %v2967_v17 = vpack.c.bf16 %v60_v13, %v56_v12  ;;  %v64_v22 = vld [vmem:[%s3775_s1 + $0x158] sm:$0xff]  ;;  %v2982_v24 = vpack.c.bf16 %v59_v19, %v55_v18  ;;  %v63_v28 = vld [vmem:[%s3775_s1 + $0x150] sm:$0xff] }
  0x14   :  { %v68_v23 = vld [vmem:[%s3775_s1 + $0x178] sm:$0xff]  ;;  %v67_v29 = vld [vmem:[%s3775_s1 + $0x170] sm:$0xff] }
  0x15   :  { %v2985_v25 = vpack.c.bf16 %v68_v23, %v64_v22  ;;  %v72_v30 = vld [vmem:[%s3775_s1 + $0x198] sm:$0xff]  ;;  %v3000_v34 = vpack.c.bf16 %v67_v29, %v63_v28  ;;  %v71_v36 = vld [vmem:[%s3775_s1 + $0x190] sm:$0xff] }
  0x16   :  { %2093 = vmatpush1.bf16.msra.mxu1 %v2826_v32  ;;  %2157 = vmatpush1.bf16.msra.mxu0 %v2826_v32  ;;  %v76_v31 = vld [vmem:[%s3775_s1 + $0x1b8] sm:$0xff]  ;;  %v75_v37 = vld [vmem:[%s3775_s1 + $0x1b0] sm:$0xff] }
  0x17   :  { %2095 = vmatprep.subr.bf16.mxu1 %v2830_v33  ;;  %2159 = vmatprep.subr.bf16.mxu0 %v2830_v33  ;;  %v3003_v35 = vpack.c.bf16 %v76_v31, %v72_v30  ;;  %v80_v40 = vld [vmem:[%s3775_s1 + $0x1d8] sm:$0xff]  ;;  %v3018_v42 = vpack.c.bf16 %v75_v37, %v71_v36  ;;  %v79_v46 = vld [vmem:[%s3775_s1 + $0x1d0] sm:$0xff] }
  0x18   :  { %v84_v41 = vld [vmem:[%s3775_s1 + $0x1f8] sm:$0xff]  ;;  %v83_v47 = vld [vmem:[%s3775_s1 + $0x1f0] sm:$0xff] }
  0x19   :  { %v3021_v43 = vpack.c.bf16 %v84_v41, %v80_v40  ;;  %v3030_v48 = vpack.c.bf16 %v83_v47, %v79_v46  ;;  %v19_v59 = vld [vmem:[%s3776_s0 + $0x10] sm:$0xff]  ;;  %v20_v2 = vld [vmem:[%s3776_s0 + $0x18] sm:$0xff] }
  0x1a   :  { %2097 = vmatpush1.bf16.msra.mxu1 %v2846_v38  ;;  %2161 = vmatpush1.bf16.msra.mxu0 %v2846_v38  ;;  %v250_v41 = vld [vmem:[%s3776_s0 + $0x38] sm:$0xff] }
  0x1b   :  { %2099 = vmatprep.subr.bf16.mxu1 %v2850_v39  ;;  %2163 = vmatprep.subr.bf16.mxu0 %v2850_v39 }
  0x1e   :  { %2101 = vmatpush1.bf16.msra.mxu1 %v2866_v44  ;;  %2165 = vmatpush1.bf16.msra.mxu0 %v2866_v44 }
  0x1f   :  { %2103 = vmatprep.subr.bf16.mxu1 %v2870_v45  ;;  %2167 = vmatprep.subr.bf16.mxu0 %v2870_v45 }
  0x22   :  { %2105 = vmatpush1.bf16.msra.mxu1 %v2886_v50  ;;  %2169 = vmatpush1.bf16.msra.mxu0 %v2886_v50 }
  0x23   :  { %2107 = vmatprep.subr.bf16.mxu1 %v2890_v51  ;;  %2203 = vmatprep.subr.bf16.mxu0 %v2736_v4 }
  0x25   :  { %150 = vmatmul.mubr.f32.vlgmr.msra.gmra.mrb[0].mxu1 %v2699_v3 }
  0x26   :  { %2109 = vmatpush1.bf16.msra.mxu1 %v2906_v56  ;;  %220 = vmatprep.mubr.f32.mxu1 %v2699_v3 }
  0x27   :  { %2111 = vmatprep.subr.bf16.mxu1 %v2910_v57 }
  0x2a   :  { %2113 = vmatpush1.bf16.msra.mxu1 %v2927_v62 }
  0x2b   :  { %2115 = vmatprep.subr.bf16.mxu1 %v2931_v63 }
  0x2e   :  { %2117 = vmatpush1.bf16.msra.mxu1 %v2946_v6 }
  0x2f   :  { %2119 = vmatprep.subr.bf16.mxu1 %v2949_v7 }
  0x32   :  { %2121 = vmatpush1.bf16.msra.mxu1 %v2964_v16 }
  0x33   :  { %2123 = vmatprep.subr.bf16.mxu1 %v2967_v17 }
  0x36   :  { %2125 = vmatpush1.bf16.msra.mxu1 %v2982_v24 }
  0x37   :  { %2127 = vmatprep.subr.bf16.mxu1 %v2985_v25 }
  0x3a   :  { %2129 = vmatpush1.bf16.msra.mxu1 %v3000_v34 }
  0x3b   :  { %2131 = vmatprep.subr.bf16.mxu1 %v3003_v35 }
  0x3e   :  { %2133 = vmatpush1.bf16.msra.mxu1 %v3018_v42 }
  0x3f   :  { %2135 = vmatprep.subr.bf16.mxu1 %v3021_v43 }
  0x42   :  { %2137 = vmatpush1.bf16.msra.mxu1 %v3030_v48 }
  0x43   :  { %2171 = vmatprep.subr.bf16.mxu1 %v2890_v51 }
  0x45   :  { %221 = vmatmul.mubr.f32.vlgmr.msra.gmra.mrb[2].mxu1 %v2699_v3 }
  0x46   :  { %2173 = vmatpush1.bf16.msra.mxu1 %v2906_v56  ;;  %450 = vmatprep.mubr.f32.mxu1 %v2699_v3 }
  0x47   :  { %2175 = vmatprep.subr.bf16.mxu1 %v2910_v57 }
  0x4a   :  { %2177 = vmatpush1.bf16.msra.mxu1 %v2927_v62 }
  0x4b   :  { %2179 = vmatprep.subr.bf16.mxu1 %v2931_v63 }
  0x4e   :  { %2181 = vmatpush1.bf16.msra.mxu1 %v2946_v6 }
  0x4f   :  { %2183 = vmatprep.subr.bf16.mxu1 %v2949_v7 }
  0x52   :  { %2185 = vmatpush1.bf16.msra.mxu1 %v2964_v16 }
  0x53   :  { %2187 = vmatprep.subr.bf16.mxu1 %v2967_v17 }
  0x56   :  { %2189 = vmatpush1.bf16.msra.mxu1 %v2982_v24 }
  0x57   :  { %2191 = vmatprep.subr.bf16.mxu1 %v2985_v25 }
  0x5a   :  { %2193 = vmatpush1.bf16.msra.mxu1 %v3000_v34 }
  0x5b   :  { %2195 = vmatprep.subr.bf16.mxu1 %v3003_v35 }
  0x5e   :  { %2197 = vmatpush1.bf16.msra.mxu1 %v3018_v42 }
  0x5f   :  { %2199 = vmatprep.subr.bf16.mxu1 %v3021_v43 }
  0x62   :  { %2201 = vmatpush1.bf16.msra.mxu1 %v3030_v48 }
  0x63   :  { %2235 = vmatprep.subr.bf16.mxu1 %v2890_v51 }
  0xf8   :  { %v151_v49 = vpop.f32.mrb[0].mxu1 }
  0xf9   :  { %v153_v52 = vpop.f32.mrb[1].mxu1  ;;  %v227_v58 = vadd.f32 %v151_v49, %v17_v54 }
  0xfa   :  { %v228_v55 = vadd.f32 %v153_v52, %v18_v53 }
  0xfc   :  { %2619 = vtanh.f32 %v228_v55 }
  0xfd   :  { %2621 = vtanh.f32 %v227_v58 }
 0x106   :  { %v2620_v1 = vpop.eup %2619 }
 0x107   :  { %v2622_v5 = vpop.eup %2621  ;;  %v235_v10 = vmul.f32 0.5, %v2620_v1 }
 0x108   :  { %v232_v12 = vmul.f32 0.5, %v2622_v5 }
 0x109   :  { %v236_v13 = vadd.f32 0.5, %v235_v10 }
 0x10a   :  { %v233_v18 = vadd.f32 0.5, %v232_v12  ;;  %v479_v12 = vld [vmem:[%s3776_s0 + $0x50] sm:$0xff] }
 0x10b   :  { %v241_v22 = vmul.f32 0.0, %v236_v13 }
 0x118   :  { %v222_v60 = vpop.f32.mrb[2].mxu1 }
 0x119   :  { %v229_v61 = vadd.f32 %v222_v60, %v19_v59  ;;  %v224_v0 = vpop.f32.mrb[3].mxu1 }
 0x11a   :  { %v230_v11 = vadd.f32 %v224_v0, %v20_v2 }
 0x11b   :  { %2623 = vtanh.f32 %v229_v61 }
 0x11c   :  { %2625 = vtanh.f32 %v230_v11 }
 0x125   :  { %v2624_v19 = vpop.eup %2623 }
 0x126   :  { %v242_v23 = vmul.f32 %v2624_v19, %v233_v18  ;;  %v2626_v29 = vpop.eup %2625 }
 0x127   :  { %v239_v30 = vmul.f32 0.5, %v2626_v29  ;;  %v480_v29 = vld [vmem:[%s3776_s0 + $0x58] sm:$0xff] }
 0x128   :  { %v3065_v28 = vadd.f32 %v242_v23, %v241_v22 }
 0x129   :  { %v240_v31 = vadd.f32 0.5, %v239_v30 }
 0x12a   :  { %2627 = vtanh.f32 %v3065_v28 }
 0x134   :  { %v2628_v36 = vpop.eup %2627 }
 0x135   :  { %v3068_v37 = vmul.f32 %v2628_v36, %v240_v31 }
 0x137   :  { %380 = vmatmul.mubr.f32.vlgmr.msra.gmra.mrb[0].mxu0 %v3068_v37  ;;  %451 = vmatmul.mubr.f32.vlgmr.msra.gmra.mrb[4].mxu1 %v3068_v37 }
 0x138   :  { %2205 = vmatpush1.bf16.msra.mxu0 %v2747_v8  ;;  %2237 = vmatpush1.bf16.msra.mxu1 %v2906_v56 }
 0x139   :  { %2207 = vmatprep.subr.bf16.mxu0 %v2749_v9  ;;  %2239 = vmatprep.subr.bf16.mxu1 %v2910_v57 }
 0x13a   :  { %609 = vmatprep.mubr.f32.mxu0 %v2699_v3  ;;  %680 = vmatprep.mubr.f32.mxu1 %v2699_v3 }
 0x13c   :  { %2209 = vmatpush1.bf16.msra.mxu0 %v2766_v14  ;;  %2241 = vmatpush1.bf16.msra.mxu1 %v2927_v62 }
 0x13d   :  { %2211 = vmatprep.subr.bf16.mxu0 %v2770_v15  ;;  %2243 = vmatprep.subr.bf16.mxu1 %v2931_v63 }
 0x140   :  { %2213 = vmatpush1.bf16.msra.mxu0 %v2786_v20  ;;  %2245 = vmatpush1.bf16.msra.mxu1 %v2946_v6 }
 0x141   :  { %2215 = vmatprep.subr.bf16.mxu0 %v2790_v21  ;;  %2247 = vmatprep.subr.bf16.mxu1 %v2949_v7 }
 0x144   :  { %2217 = vmatpush1.bf16.msra.mxu0 %v2806_v26  ;;  %2249 = vmatpush1.bf16.msra.mxu1 %v2964_v16 }
 0x145   :  { %2219 = vmatprep.subr.bf16.mxu0 %v2810_v27  ;;  %2251 = vmatprep.subr.bf16.mxu1 %v2967_v17 }
 0x148   :  { %2221 = vmatpush1.bf16.msra.mxu0 %v2826_v32  ;;  %2253 = vmatpush1.bf16.msra.mxu1 %v2982_v24  ;;  %v247_v32 = vld [vmem:[%s3776_s0 + $0x20] sm:$0xff] }
 0x149   :  { %2223 = vmatprep.subr.bf16.mxu0 %v2830_v33  ;;  %2255 = vmatprep.subr.bf16.mxu1 %v2985_v25  ;;  %v248_v33 = vld [vmem:[%s3776_s0 + $0x28] sm:$0xff] }
 0x14c   :  { %2225 = vmatpush1.bf16.msra.mxu0 %v2846_v38  ;;  %2257 = vmatpush1.bf16.msra.mxu1 %v3000_v34 }
 0x14d   :  { %2227 = vmatprep.subr.bf16.mxu0 %v2850_v39  ;;  %2259 = vmatprep.subr.bf16.mxu1 %v3003_v35  ;;  %v249_v39 = vld [vmem:[%s3776_s0 + $0x30] sm:$0xff] }
 0x150   :  { %2229 = vmatpush1.bf16.msra.mxu0 %v2866_v44  ;;  %2261 = vmatpush1.bf16.msra.mxu1 %v3018_v42 }
 0x151   :  { %2231 = vmatprep.subr.bf16.mxu0 %v2870_v45  ;;  %2263 = vmatprep.subr.bf16.mxu1 %v3021_v43 }
 0x154   :  { %2233 = vmatpush1.bf16.msra.mxu0 %v2886_v50  ;;  %2265 = vmatpush1.bf16.msra.mxu1 %v3030_v48 }
 0x155   :  { %2267 = vmatprep.subr.bf16.mxu0 %v2736_v4  ;;  %2299 = vmatprep.subr.bf16.mxu1 %v2890_v51 }
 0x20a   :  { %v381_v38 = vpop.f32.mrb[0].mxu0  ;;  %v452_v44 = vpop.f32.mrb[4].mxu1 }
 0x20b   :  { %v457_v45 = vadd.f32 %v381_v38, %v247_v32  ;;  %v383_v50 = vpop.f32.mrb[1].mxu0  ;;  %v454_v40 = vpop.f32.mrb[5].mxu1  ;;  %v459_v51 = vadd.f32 %v452_v44, %v249_v39 }
 0x20c   :  { %v458_v4 = vadd.f32 %v383_v50, %v248_v33  ;;  %v460_v46 = vadd.f32 %v454_v40, %v250_v41 }
 0x20d   :  { %2629 = vtanh.f32 %v457_v45 }
 0x20e   :  { %2631 = vtanh.f32 %v458_v4 }
 0x20f   :  { %2633 = vtanh.f32 %v459_v51 }
 0x210   :  { %2635 = vtanh.f32 %v460_v46 }
 0x217   :  { %v2630_v47 = vpop.eup %2629 }
 0x218   :  { %v462_v49 = vmul.f32 0.5, %v2630_v47  ;;  %v2632_v52 = vpop.eup %2631 }
 0x219   :  { %v465_v54 = vmul.f32 0.5, %v2632_v52  ;;  %v2634_v55 = vpop.eup %2633  ;;  %v946_v52 = vld [vmem:[%s3775_s1 + $0x28] sm:$0xff] }
 0x21a   :  { %v463_v53 = vadd.f32 0.5, %v462_v49  ;;  %v2636_v0 = vpop.eup %2635  ;;  %v942_v49 = vld [vmem:[%s3775_s1 + $0x8] sm:$0xff] }
 0x21b   :  { %v466_v58 = vadd.f32 0.5, %v465_v54  ;;  %v469_v1 = vmul.f32 0.5, %v2636_v0  ;;  %v3245_v54 = vpack.c.bf16 %v946_v52, %v942_v49  ;;  %v943_v0 = vld [vmem:[%s3775_s1 + $0x10] sm:$0xff]  ;;  %v980_v49 = vld [vmem:[%s3775_s1 + $0x138] sm:$0xff] }
 0x21c   :  { %v472_v59 = vmul.f32 %v2634_v55, %v463_v53  ;;  %v944_v53 = vld [vmem:[%s3775_s1 + $0x18] sm:$0xff]  ;;  %v975_v52 = vld [vmem:[%s3775_s1 + $0x110] sm:$0xff] }
 0x21d   :  { %v471_v60 = vmul.f32 %v466_v58, %v3065_v28  ;;  %v470_v2 = vadd.f32 0.5, %v469_v1  ;;  %v948_v55 = vld [vmem:[%s3775_s1 + $0x38] sm:$0xff]  ;;  %v941_v58 = vld [vmem:[%s3775_s1] sm:$0xff]  ;;  %v947_v1 = vld [vmem:[%s3775_s1 + $0x30] sm:$0xff] }
 0x21f   :  { %v3119_v61 = vadd.f32 %v472_v59, %v471_v60  ;;  %v945_v59 = vld [vmem:[%s3775_s1 + $0x20] sm:$0xff]  ;;  %v3256_v60 = vpack.c.bf16 %v948_v55, %v944_v53  ;;  %v979_v53 = vld [vmem:[%s3775_s1 + $0x130] sm:$0xff] }
 0x221   :  { %2637 = vtanh.f32 %v3119_v61 }
 0x22b   :  { %v2638_v5 = vpop.eup %2637 }
 0x22c   :  { %v3122_v10 = vmul.f32 %v2638_v5, %v470_v2  ;;  %v3267_v2 = vpack.c.bf16 %v947_v1, %v943_v0  ;;  %v950_v5 = vld [vmem:[%s3775_s1 + $0x48] sm:$0xff]  ;;  %v988_v0 = vld [vmem:[%s3775_s1 + $0x178] sm:$0xff] }
 0x22e   :  { %610 = vmatmul.mubr.f32.vlgmr.msra.gmra.mrb[2].mxu0 %v3122_v10  ;;  %681 = vmatmul.mubr.f32.vlgmr.msra.gmra.mrb[6].mxu1 %v3122_v10 }
 0x22f   :  { %2269 = vmatpush1.bf16.msra.mxu0 %v2747_v8  ;;  %2301 = vmatpush1.bf16.msra.mxu1 %v2906_v56  ;;  %v743_v8 = vld [vmem:[%s3775_s1 + $0x100] sm:$0xff] }
 0x230   :  { %2271 = vmatprep.subr.bf16.mxu0 %v2749_v9  ;;  %2303 = vmatprep.subr.bf16.mxu1 %v2910_v57  ;;  %v747_v9 = vld [vmem:[%s3775_s1 + $0x120] sm:$0xff]  ;;  %v760_v57 = vld [vmem:[%s3775_s1 + $0x188] sm:$0xff] }
 0x231   :  { %839 = vmatprep.mubr.f32.mxu0 %v2699_v3  ;;  %910 = vmatprep.mubr.f32.mxu1 %v2699_v3 }
 0x233   :  { %2273 = vmatpush1.bf16.msra.mxu0 %v2766_v14  ;;  %2305 = vmatpush1.bf16.msra.mxu1 %v2927_v62  ;;  %v3157_v14 = vpack.c.bf16 %v747_v9, %v743_v8  ;;  %v764_v62 = vld [vmem:[%s3775_s1 + $0x1a8] sm:$0xff]  ;;  %v952_v9 = vld [vmem:[%s3775_s1 + $0x58] sm:$0xff] }
 0x234   :  { %2275 = vmatprep.subr.bf16.mxu0 %v2770_v15  ;;  %2307 = vmatprep.subr.bf16.mxu1 %v2931_v63  ;;  %v752_v15 = vld [vmem:[%s3775_s1 + $0x148] sm:$0xff]  ;;  %v3184_v63 = vpack.c.bf16 %v764_v62, %v760_v57 }
 0x235   :  { %v954_v8 = vld [vmem:[%s3775_s1 + $0x68] sm:$0xff] }
 0x237   :  { %2277 = vmatpush1.bf16.msra.mxu0 %v2786_v20  ;;  %2309 = vmatpush1.bf16.msra.mxu1 %v2946_v6  ;;  %v756_v20 = vld [vmem:[%s3775_s1 + $0x168] sm:$0xff]  ;;  %v759_v6 = vld [vmem:[%s3775_s1 + $0x180] sm:$0xff] }
 0x238   :  { %2279 = vmatprep.subr.bf16.mxu0 %v2790_v21  ;;  %2311 = vmatprep.subr.bf16.mxu1 %v2949_v7  ;;  %v3166_v21 = vpack.c.bf16 %v756_v20, %v752_v15  ;;  %v763_v7 = vld [vmem:[%s3775_s1 + $0x1a0] sm:$0xff]  ;;  %v3281_v15 = vpack.c.bf16 %v954_v8, %v950_v5  ;;  %v956_v20 = vld [vmem:[%s3775_s1 + $0x78] sm:$0xff]  ;;  %v983_v5 = vld [vmem:[%s3775_s1 + $0x150] sm:$0xff] }
 0x239   :  { %v3292_v57 = vpack.c.bf16 %v956_v20, %v952_v9  ;;  %v987_v8 = vld [vmem:[%s3775_s1 + $0x170] sm:$0xff]  ;;  %v992_v20 = vld [vmem:[%s3775_s1 + $0x198] sm:$0xff] }
 0x23a   :  { %v3423_v9 = vpack.c.bf16 %v987_v8, %v983_v5 }
 0x23b   :  { %2281 = vmatpush1.bf16.msra.mxu0 %v2806_v26  ;;  %2313 = vmatpush1.bf16.msra.mxu1 %v2964_v16  ;;  %v751_v26 = vld [vmem:[%s3775_s1 + $0x140] sm:$0xff]  ;;  %v3192_v16 = vpack.c.bf16 %v763_v7, %v759_v6  ;;  %v951_v6 = vld [vmem:[%s3775_s1 + $0x50] sm:$0xff] }
 0x23c   :  { %2283 = vmatprep.subr.bf16.mxu0 %v2810_v27  ;;  %2315 = vmatprep.subr.bf16.mxu1 %v2967_v17  ;;  %v755_v27 = vld [vmem:[%s3775_s1 + $0x160] sm:$0xff]  ;;  %v768_v17 = vld [vmem:[%s3775_s1 + $0x1c8] sm:$0xff]  ;;  %v955_v7 = vld [vmem:[%s3775_s1 + $0x70] sm:$0xff] }
 0x23d   :  { %v3174_v56 = vpack.c.bf16 %v755_v27, %v751_v26  ;;  %v949_v26 = vld [vmem:[%s3775_s1 + $0x40] sm:$0xff] }
 0x23e   :  { %v953_v27 = vld [vmem:[%s3775_s1 + $0x60] sm:$0xff] }
 0x23f   :  { %2317 = vmatpush1.bf16.msra.mxu1 %v2982_v24  ;;  %2285 = vmatpush1.bf16.msra.mxu0 %v3157_v14  ;;  %v772_v24 = vld [vmem:[%s3775_s1 + $0x1e8] sm:$0xff]  ;;  %v3294_v62 = vpack.c.bf16 %v953_v27, %v949_v26  ;;  %v996_v26 = vld [vmem:[%s3775_s1 + $0x1b8] sm:$0xff] }
 0x240   :  { %2319 = vmatprep.subr.bf16.mxu1 %v2985_v25  ;;  %2287 = vmatprep.subr.bf16.mxu0 %v3166_v21  ;;  %v3202_v25 = vpack.c.bf16 %v772_v24, %v768_v17  ;;  %v3303_v17 = vpack.c.bf16 %v955_v7, %v951_v6  ;;  %v958_v24 = vld [vmem:[%s3775_s1 + $0x88] sm:$0xff]  ;;  %v3435_v27 = vpack.c.bf16 %v996_v26, %v992_v20  ;;  %v991_v6 = vld [vmem:[%s3775_s1 + $0x190] sm:$0xff] }
 0x241   :  { %v995_v7 = vld [vmem:[%s3775_s1 + $0x1b0] sm:$0xff] }
 0x243   :  { %2321 = vmatpush1.bf16.msra.mxu1 %v3000_v34  ;;  %2289 = vmatpush1.bf16.msra.mxu0 %v3174_v56  ;;  %v767_v34 = vld [vmem:[%s3775_s1 + $0x1c0] sm:$0xff] }
 0x244   :  { %2323 = vmatprep.subr.bf16.mxu1 %v3003_v35  ;;  %2291 = vmatprep.subr.bf16.mxu0 %v3184_v63  ;;  %v771_v35 = vld [vmem:[%s3775_s1 + $0x1e0] sm:$0xff] }
 0x247   :  { %2325 = vmatpush1.bf16.msra.mxu1 %v3018_v42  ;;  %2293 = vmatpush1.bf16.msra.mxu0 %v3192_v16  ;;  %v3210_v42 = vpack.c.bf16 %v771_v35, %v767_v34  ;;  %v962_v34 = vld [vmem:[%s3775_s1 + $0xa8] sm:$0xff]  ;;  %v960_v35 = vld [vmem:[%s3775_s1 + $0x98] sm:$0xff] }
 0x248   :  { %2327 = vmatprep.subr.bf16.mxu1 %v3021_v43  ;;  %2295 = vmatprep.subr.bf16.mxu0 %v3202_v25  ;;  %v477_v43 = vld [vmem:[%s3776_s0 + $0x40] sm:$0xff] }
 0x24b   :  { %2329 = vmatpush1.bf16.msra.mxu1 %v3030_v48  ;;  %2297 = vmatpush1.bf16.msra.mxu0 %v3210_v42  ;;  %v478_v48 = vld [vmem:[%s3776_s0 + $0x48] sm:$0xff] }
 0x24c   :  { %2331 = vmatprep.subr.bf16.mxu0 %v3245_v54  ;;  %2363 = vmatprep.subr.bf16.mxu1 %v3256_v60 }
 0x301   :  { %v611_v11 = vpop.f32.mrb[2].mxu0  ;;  %v682_v13 = vpop.f32.mrb[6].mxu1 }
 0x302   :  { %v687_v18 = vadd.f32 %v611_v11, %v477_v43  ;;  %v613_v19 = vpop.f32.mrb[3].mxu0  ;;  %v684_v22 = vpop.f32.mrb[7].mxu1  ;;  %v689_v28 = vadd.f32 %v682_v13, %v479_v12  ;;  %v3317_v43 = vpack.c.bf16 %v962_v34, %v958_v24  ;;  %v957_v11 = vld [vmem:[%s3775_s1 + $0x80] sm:$0xff]  ;;  %v3443_v24 = vpack.c.bf16 %v995_v7, %v991_v6  ;;  %v1000_v34 = vld [vmem:[%s3775_s1 + $0x1d8] sm:$0xff] }
 0x303   :  { %v688_v23 = vadd.f32 %v613_v19, %v478_v48  ;;  %v690_v30 = vadd.f32 %v684_v22, %v480_v29  ;;  %v964_v48 = vld [vmem:[%s3775_s1 + $0xb8] sm:$0xff]  ;;  %v961_v12 = vld [vmem:[%s3775_s1 + $0xa0] sm:$0xff]  ;;  %v959_v19 = vld [vmem:[%s3775_s1 + $0x90] sm:$0xff] }
 0x304   :  { %2639 = vtanh.f32 %v687_v18  ;;  %v3328_v13 = vpack.c.bf16 %v964_v48, %v960_v35  ;;  %v3330_v18 = vpack.c.bf16 %v961_v12, %v957_v11  ;;  %v963_v22 = vld [vmem:[%s3775_s1 + $0xb0] sm:$0xff]  ;;  %v970_v29 = vld [vmem:[%s3775_s1 + $0xe8] sm:$0xff]  ;;  %v1004_v35 = vld [vmem:[%s3775_s1 + $0x1f8] sm:$0xff] }
 0x305   :  { %2641 = vtanh.f32 %v688_v23  ;;  %v3339_v23 = vpack.c.bf16 %v963_v22, %v959_v19  ;;  %v3455_v48 = vpack.c.bf16 %v1004_v35, %v1000_v34  ;;  %v999_v11 = vld [vmem:[%s3775_s1 + $0x1d0] sm:$0xff]  ;;  %v707_v22 = vld [vmem:[%s3776_s0 + $0x60] sm:$0xff] }
 0x306   :  { %2643 = vtanh.f32 %v689_v28  ;;  %v966_v28 = vld [vmem:[%s3775_s1 + $0xc8] sm:$0xff]  ;;  %v1003_v12 = vld [vmem:[%s3775_s1 + $0x1f0] sm:$0xff] }
 0x307   :  { %2645 = vtanh.f32 %v690_v30  ;;  %v968_v30 = vld [vmem:[%s3775_s1 + $0xd8] sm:$0xff]  ;;  %v3463_v19 = vpack.c.bf16 %v1003_v12, %v999_v11 }
 0x30e   :  { %v2640_v31 = vpop.eup %2639 }
 0x30f   :  { %v692_v36 = vmul.f32 0.5, %v2640_v31  ;;  %v2642_v32 = vpop.eup %2641  ;;  %v3353_v31 = vpack.c.bf16 %v970_v29, %v966_v28  ;;  %v708_v28 = vld [vmem:[%s3776_s0 + $0x68] sm:$0xff] }
 0x310   :  { %v695_v38 = vmul.f32 0.5, %v2642_v32  ;;  %v2644_v39 = vpop.eup %2643  ;;  %v965_v32 = vld [vmem:[%s3775_s1 + $0xc0] sm:$0xff] }
 0x311   :  { %v693_v33 = vadd.f32 0.5, %v692_v36  ;;  %v2646_v4 = vpop.eup %2645  ;;  %v972_v36 = vld [vmem:[%s3775_s1 + $0xf8] sm:$0xff] }
 0x312   :  { %v696_v44 = vadd.f32 0.5, %v695_v38  ;;  %v699_v51 = vmul.f32 0.5, %v2646_v4  ;;  %v3364_v38 = vpack.c.bf16 %v972_v36, %v968_v30  ;;  %v974_v4 = vld [vmem:[%s3775_s1 + $0x108] sm:$0xff]  ;;  %v709_v30 = vld [vmem:[%s3776_s0 + $0x70] sm:$0xff] }
 0x313   :  { %v702_v45 = vmul.f32 %v2644_v39, %v693_v33  ;;  %v969_v33 = vld [vmem:[%s3775_s1 + $0xe0] sm:$0xff] }
 0x314   :  { %v701_v50 = vmul.f32 %v696_v44, %v3119_v61  ;;  %v700_v41 = vadd.f32 0.5, %v699_v51  ;;  %v3258_v61 = vpack.c.bf16 %v945_v59, %v941_v58  ;;  %v3366_v39 = vpack.c.bf16 %v969_v33, %v965_v32  ;;  %v967_v44 = vld [vmem:[%s3775_s1 + $0xd0] sm:$0xff]  ;;  %v978_v51 = vld [vmem:[%s3775_s1 + $0x128] sm:$0xff]  ;;  %v984_v59 = vld [vmem:[%s3775_s1 + $0x158] sm:$0xff] }
 0x315   :  { %v3402_v58 = vpack.c.bf16 %v979_v53, %v975_v52  ;;  %v3415_v1 = vpack.c.bf16 %v988_v0, %v984_v59 }
 0x316   :  { %v3227_v40 = vadd.f32 %v702_v45, %v701_v50  ;;  %v971_v45 = vld [vmem:[%s3775_s1 + $0xf0] sm:$0xff] }
 0x317   :  { %v3375_v50 = vpack.c.bf16 %v971_v45, %v967_v44 }
 0x318   :  { %2647 = vtanh.f32 %v3227_v40 }
 0x322   :  { %v2648_v46 = vpop.eup %2647 }
 0x323   :  { %v3230_v47 = vmul.f32 %v2648_v46, %v700_v41  ;;  %v976_v41 = vld [vmem:[%s3775_s1 + $0x118] sm:$0xff]  ;;  %v3389_v46 = vpack.c.bf16 %v978_v51, %v974_v4 }
 0x324   :  { %v3400_v55 = vpack.c.bf16 %v980_v49, %v976_v41  ;;  %v710_v51 = vld [vmem:[%s3776_s0 + $0x78] sm:$0xff] }
 0x325   :  { %840 = vmatmul.mubr.f32.vlgmr.msra.gmra.mrb[4].mxu0 %v3230_v47  ;;  %911 = vmatmul.mubr.f32.vlgmr.msra.gmra.mrb[8].mxu1 %v3230_v47 }
 0x326   :  { %1069 = vmatprep.mubr.f32.mxu0 %v2699_v3  ;;  %1140 = vmatprep.mubr.f32.mxu1 %v2699_v3 }
 0x327   :  { %2333 = vmatpush1.bf16.msra.mxu0 %v3258_v61  ;;  %2365 = vmatpush1.bf16.msra.mxu1 %v3267_v2 }
 0x328   :  { %2335 = vmatprep.subr.bf16.mxu0 %v3281_v15  ;;  %2367 = vmatprep.subr.bf16.mxu1 %v3292_v57 }
 0x32b   :  { %2337 = vmatpush1.bf16.msra.mxu0 %v3294_v62  ;;  %2369 = vmatpush1.bf16.msra.mxu1 %v3303_v17 }
 0x32c   :  { %2339 = vmatprep.subr.bf16.mxu0 %v3317_v43  ;;  %2371 = vmatprep.subr.bf16.mxu1 %v3328_v13 }
 0x32f   :  { %2341 = vmatpush1.bf16.msra.mxu0 %v3330_v18  ;;  %2373 = vmatpush1.bf16.msra.mxu1 %v3339_v23 }
 0x330   :  { %2343 = vmatprep.subr.bf16.mxu0 %v3353_v31  ;;  %2375 = vmatprep.subr.bf16.mxu1 %v3364_v38 }
 0x333   :  { %2345 = vmatpush1.bf16.msra.mxu0 %v3366_v39  ;;  %2377 = vmatpush1.bf16.msra.mxu1 %v3375_v50 }
 0x334   :  { %2347 = vmatprep.subr.bf16.mxu0 %v3389_v46  ;;  %2379 = vmatprep.subr.bf16.mxu1 %v3400_v55 }
 0x337   :  { %2349 = vmatpush1.bf16.msra.mxu0 %v3157_v14  ;;  %2381 = vmatpush1.bf16.msra.mxu1 %v3402_v58 }
 0x338   :  { %2351 = vmatprep.subr.bf16.mxu0 %v3166_v21  ;;  %2383 = vmatprep.subr.bf16.mxu1 %v3415_v1 }
 0x33b   :  { %2353 = vmatpush1.bf16.msra.mxu0 %v3174_v56  ;;  %2385 = vmatpush1.bf16.msra.mxu1 %v3423_v9 }
 0x33c   :  { %2355 = vmatprep.subr.bf16.mxu0 %v3184_v63  ;;  %2387 = vmatprep.subr.bf16.mxu1 %v3435_v27 }
 0x33f   :  { %2357 = vmatpush1.bf16.msra.mxu0 %v3192_v16  ;;  %2389 = vmatpush1.bf16.msra.mxu1 %v3443_v24 }
 0x340   :  { %2359 = vmatprep.subr.bf16.mxu0 %v3202_v25  ;;  %2391 = vmatprep.subr.bf16.mxu1 %v3455_v48 }
 0x343   :  { %2361 = vmatpush1.bf16.msra.mxu0 %v3210_v42  ;;  %2393 = vmatpush1.bf16.msra.mxu1 %v3463_v19 }
 0x344   :  { %2395 = vmatprep.subr.bf16.mxu0 %v3245_v54  ;;  %2427 = vmatprep.subr.bf16.mxu1 %v3256_v60 }
 0x3f8   :  { %v841_v29 = vpop.f32.mrb[4].mxu0  ;;  %v912_v36 = vpop.f32.mrb[8].mxu1 }
 0x3f9   :  { %v917_v32 = vadd.f32 %v841_v29, %v707_v22  ;;  %v843_v33 = vpop.f32.mrb[5].mxu0  ;;  %v914_v44 = vpop.f32.mrb[9].mxu1  ;;  %v919_v4 = vadd.f32 %v912_v36, %v709_v30  ;;  %v938_v22 = vld [vmem:[%s3776_s0 + $0x88] sm:$0xff]  ;;  %v939_v29 = vld [vmem:[%s3776_s0 + $0x90] sm:$0xff] }
 0x3fa   :  { %v918_v45 = vadd.f32 %v843_v33, %v708_v28  ;;  %v920_v41 = vadd.f32 %v914_v44, %v710_v51 }
 0x3fb   :  { %2649 = vtanh.f32 %v917_v32 }
 0x3fc   :  { %2651 = vtanh.f32 %v918_v45 }
 0x3fd   :  { %2653 = vtanh.f32 %v919_v4  ;;  %v940_v4 = vld [vmem:[%s3776_s0 + $0x98] sm:$0xff] }
 0x3fe   :  { %2655 = vtanh.f32 %v920_v41 }
 0x405   :  { %v2650_v49 = vpop.eup %2649 }
 0x406   :  { %v922_v52 = vmul.f32 0.5, %v2650_v49  ;;  %v2652_v53 = vpop.eup %2651 }
 0x407   :  { %v925_v0 = vmul.f32 0.5, %v2652_v53  ;;  %v2654_v5 = vpop.eup %2653 }
 0x408   :  { %v923_v59 = vadd.f32 0.5, %v922_v52  ;;  %v2656_v7 = vpop.eup %2655 }
 0x409   :  { %v926_v8 = vadd.f32 0.5, %v925_v0  ;;  %v929_v34 = vmul.f32 0.5, %v2656_v7 }
 0x40a   :  { %v932_v20 = vmul.f32 %v2654_v5, %v923_v59 }
 0x40b   :  { %v931_v26 = vmul.f32 %v926_v8, %v3227_v40  ;;  %v930_v35 = vadd.f32 0.5, %v929_v34  ;;  %v937_v40 = vld [vmem:[%s3776_s0 + $0x80] sm:$0xff] }
 0x40d   :  { %v3483_v6 = vadd.f32 %v932_v20, %v931_v26 }
 0x40f   :  { %2657 = vtanh.f32 %v3483_v6 }
 0x419   :  { %v2658_v11 = vpop.eup %2657 }
 0x41a   :  { %v3486_v12 = vmul.f32 %v2658_v11, %v930_v35 }
 0x41c   :  { %1070 = vmatmul.mubr.f32.vlgmr.msra.gmra.mrb[6].mxu0 %v3486_v12  ;;  %1141 = vmatmul.mubr.f32.vlgmr.msra.gmra.mrb[10].mxu1 %v3486_v12 }
 0x41d   :  { %2397 = vmatpush1.bf16.msra.mxu0 %v3258_v61  ;;  %2429 = vmatpush1.bf16.msra.mxu1 %v3267_v2 }
 0x41e   :  { %2399 = vmatprep.subr.bf16.mxu0 %v3281_v15  ;;  %2431 = vmatprep.subr.bf16.mxu1 %v3292_v57 }
 0x41f   :  { %1299 = vmatprep.mubr.f32.mxu0 %v2699_v3  ;;  %1370 = vmatprep.mubr.f32.mxu1 %v2699_v3 }
 0x421   :  { %2401 = vmatpush1.bf16.msra.mxu0 %v3294_v62  ;;  %2433 = vmatpush1.bf16.msra.mxu1 %v3303_v17 }
 0x422   :  { %2403 = vmatprep.subr.bf16.mxu0 %v3317_v43  ;;  %2435 = vmatprep.subr.bf16.mxu1 %v3328_v13 }
 0x425   :  { %2405 = vmatpush1.bf16.msra.mxu0 %v3330_v18  ;;  %2437 = vmatpush1.bf16.msra.mxu1 %v3339_v23 }
 0x426   :  { %2407 = vmatprep.subr.bf16.mxu0 %v3353_v31  ;;  %2439 = vmatprep.subr.bf16.mxu1 %v3364_v38 }
 0x429   :  { %2409 = vmatpush1.bf16.msra.mxu0 %v3366_v39  ;;  %2441 = vmatpush1.bf16.msra.mxu1 %v3375_v50 }
 0x42a   :  { %2411 = vmatprep.subr.bf16.mxu0 %v3389_v46  ;;  %2443 = vmatprep.subr.bf16.mxu1 %v3400_v55 }
 0x42d   :  { %2413 = vmatpush1.bf16.msra.mxu0 %v3157_v14  ;;  %2445 = vmatpush1.bf16.msra.mxu1 %v3402_v58 }
 0x42e   :  { %2415 = vmatprep.subr.bf16.mxu0 %v3166_v21  ;;  %2447 = vmatprep.subr.bf16.mxu1 %v3415_v1 }
 0x431   :  { %2417 = vmatpush1.bf16.msra.mxu0 %v3174_v56  ;;  %2449 = vmatpush1.bf16.msra.mxu1 %v3423_v9 }
 0x432   :  { %2419 = vmatprep.subr.bf16.mxu0 %v3184_v63  ;;  %2451 = vmatprep.subr.bf16.mxu1 %v3435_v27 }
 0x435   :  { %2421 = vmatpush1.bf16.msra.mxu0 %v3192_v16  ;;  %2453 = vmatpush1.bf16.msra.mxu1 %v3443_v24 }
 0x436   :  { %2423 = vmatprep.subr.bf16.mxu0 %v3202_v25  ;;  %2455 = vmatprep.subr.bf16.mxu1 %v3455_v48 }
 0x439   :  { %2425 = vmatpush1.bf16.msra.mxu0 %v3210_v42  ;;  %2457 = vmatpush1.bf16.msra.mxu1 %v3463_v19 }
 0x43a   :  { %2459 = vmatprep.subr.bf16.mxu0 %v3245_v54  ;;  %2491 = vmatprep.subr.bf16.mxu1 %v3256_v60 }
 0x4ef   :  { %v1071_v28 = vpop.f32.mrb[6].mxu0  ;;  %v1142_v30 = vpop.f32.mrb[10].mxu1 }
 0x4f0   :  { %v1147_v36 = vadd.f32 %v1071_v28, %v937_v40  ;;  %v1073_v32 = vpop.f32.mrb[7].mxu0  ;;  %v1144_v33 = vpop.f32.mrb[11].mxu1  ;;  %v1149_v45 = vadd.f32 %v1142_v30, %v939_v29 }
 0x4f1   :  { %v1148_v44 = vadd.f32 %v1073_v32, %v938_v22  ;;  %v1150_v51 = vadd.f32 %v1144_v33, %v940_v4  ;;  %v1170_v22 = vld [vmem:[%s3776_s0 + $0xb8] sm:$0xff] }
 0x4f2   :  { %2659 = vtanh.f32 %v1147_v36 }
 0x4f3   :  { %2661 = vtanh.f32 %v1148_v44 }
 0x4f4   :  { %2663 = vtanh.f32 %v1149_v45 }
 0x4f5   :  { %2665 = vtanh.f32 %v1150_v51 }
 0x4fc   :  { %v2660_v41 = vpop.eup %2659 }
 0x4fd   :  { %v1152_v49 = vmul.f32 0.5, %v2660_v41  ;;  %v2662_v52 = vpop.eup %2661 }
 0x4fe   :  { %v1155_v59 = vmul.f32 0.5, %v2662_v52  ;;  %v2664_v0 = vpop.eup %2663 }
 0x4ff   :  { %v1153_v53 = vadd.f32 0.5, %v1152_v49  ;;  %v2666_v7 = vpop.eup %2665 }
 0x500   :  { %v1156_v5 = vadd.f32 0.5, %v1155_v59  ;;  %v1159_v34 = vmul.f32 0.5, %v2666_v7 }
 0x501   :  { %v1162_v8 = vmul.f32 %v2664_v0, %v1153_v53 }
 0x502   :  { %v1161_v20 = vmul.f32 %v1156_v5, %v3483_v6  ;;  %v1160_v35 = vadd.f32 0.5, %v1159_v34  ;;  %v1397_v5 = vld [vmem:[%s3776_s0 + $0xc0] sm:$0xff] }
 0x504   :  { %v3537_v26 = vadd.f32 %v1162_v8, %v1161_v20  ;;  %v1398_v8 = vld [vmem:[%s3776_s0 + $0xc8] sm:$0xff] }
 0x506   :  { %2667 = vtanh.f32 %v3537_v26 }
 0x510   :  { %v2668_v11 = vpop.eup %2667 }
 0x511   :  { %v3540_v40 = vmul.f32 %v2668_v11, %v1160_v35 }
 0x513   :  { %1300 = vmatmul.mubr.f32.vlgmr.msra.gmra.mrb[8].mxu0 %v3540_v40  ;;  %1371 = vmatmul.mubr.f32.vlgmr.msra.gmra.mrb[12].mxu1 %v3540_v40 }
 0x514   :  { %2461 = vmatpush1.bf16.msra.mxu0 %v3258_v61  ;;  %2493 = vmatpush1.bf16.msra.mxu1 %v3267_v2 }
 0x515   :  { %2463 = vmatprep.subr.bf16.mxu0 %v3281_v15  ;;  %2495 = vmatprep.subr.bf16.mxu1 %v3292_v57 }
 0x516   :  { %1529 = vmatprep.mubr.f32.mxu0 %v2699_v3  ;;  %1600 = vmatprep.mubr.f32.mxu1 %v2699_v3 }
 0x518   :  { %2465 = vmatpush1.bf16.msra.mxu0 %v3294_v62  ;;  %2497 = vmatpush1.bf16.msra.mxu1 %v3303_v17 }
 0x519   :  { %2467 = vmatprep.subr.bf16.mxu0 %v3317_v43  ;;  %2499 = vmatprep.subr.bf16.mxu1 %v3328_v13 }
 0x51c   :  { %2469 = vmatpush1.bf16.msra.mxu0 %v3330_v18  ;;  %2501 = vmatpush1.bf16.msra.mxu1 %v3339_v23 }
 0x51d   :  { %2471 = vmatprep.subr.bf16.mxu0 %v3353_v31  ;;  %2503 = vmatprep.subr.bf16.mxu1 %v3364_v38 }
 0x520   :  { %2473 = vmatpush1.bf16.msra.mxu0 %v3366_v39  ;;  %2505 = vmatpush1.bf16.msra.mxu1 %v3375_v50 }
 0x521   :  { %2475 = vmatprep.subr.bf16.mxu0 %v3389_v46  ;;  %2507 = vmatprep.subr.bf16.mxu1 %v3400_v55 }
 0x524   :  { %2477 = vmatpush1.bf16.msra.mxu0 %v3157_v14  ;;  %2509 = vmatpush1.bf16.msra.mxu1 %v3402_v58  ;;  %v1167_v14 = vld [vmem:[%s3776_s0 + $0xa0] sm:$0xff] }
 0x525   :  { %2479 = vmatprep.subr.bf16.mxu0 %v3166_v21  ;;  %2511 = vmatprep.subr.bf16.mxu1 %v3415_v1  ;;  %v1168_v21 = vld [vmem:[%s3776_s0 + $0xa8] sm:$0xff] }
 0x528   :  { %2481 = vmatpush1.bf16.msra.mxu0 %v3174_v56  ;;  %2513 = vmatpush1.bf16.msra.mxu1 %v3423_v9 }
 0x529   :  { %2483 = vmatprep.subr.bf16.mxu0 %v3184_v63  ;;  %2515 = vmatprep.subr.bf16.mxu1 %v3435_v27  ;;  %v1169_v63 = vld [vmem:[%s3776_s0 + $0xb0] sm:$0xff] }
 0x52c   :  { %2485 = vmatpush1.bf16.msra.mxu0 %v3192_v16  ;;  %2517 = vmatpush1.bf16.msra.mxu1 %v3443_v24 }
 0x52d   :  { %2487 = vmatprep.subr.bf16.mxu0 %v3202_v25  ;;  %2519 = vmatprep.subr.bf16.mxu1 %v3455_v48 }
 0x530   :  { %2489 = vmatpush1.bf16.msra.mxu0 %v3210_v42  ;;  %2521 = vmatpush1.bf16.msra.mxu1 %v3463_v19 }
 0x531   :  { %2523 = vmatprep.subr.bf16.mxu0 %v3245_v54  ;;  %2555 = vmatprep.subr.bf16.mxu1 %v3256_v60 }
 0x5e6   :  { %v1301_v56 = vpop.f32.mrb[8].mxu0  ;;  %v1372_v16 = vpop.f32.mrb[12].mxu1 }
 0x5e7   :  { %v1377_v25 = vadd.f32 %v1301_v56, %v1167_v14  ;;  %v1303_v42 = vpop.f32.mrb[9].mxu0  ;;  %v1374_v6 = vpop.f32.mrb[13].mxu1  ;;  %v1379_v60 = vadd.f32 %v1372_v16, %v1169_v63  ;;  %v1400_v56 = vld [vmem:[%s3776_s0 + $0xd8] sm:$0xff] }
 0x5e8   :  { %v1378_v54 = vadd.f32 %v1303_v42, %v1168_v21  ;;  %v1380_v28 = vadd.f32 %v1374_v6, %v1170_v22 }
 0x5e9   :  { %2669 = vtanh.f32 %v1377_v25 }
 0x5ea   :  { %2671 = vtanh.f32 %v1378_v54 }
 0x5eb   :  { %2673 = vtanh.f32 %v1379_v60 }
 0x5ec   :  { %2675 = vtanh.f32 %v1380_v28 }
 0x5f3   :  { %v2670_v29 = vpop.eup %2669 }
 0x5f4   :  { %v1382_v30 = vmul.f32 0.5, %v2670_v29  ;;  %v2672_v36 = vpop.eup %2671 }
 0x5f5   :  { %v1385_v33 = vmul.f32 0.5, %v2672_v36  ;;  %v2674_v44 = vpop.eup %2673 }
 0x5f6   :  { %v1383_v32 = vadd.f32 0.5, %v1382_v30  ;;  %v2676_v49 = vpop.eup %2675 }
 0x5f7   :  { %v1386_v45 = vadd.f32 0.5, %v1385_v33  ;;  %v1389_v52 = vmul.f32 0.5, %v2676_v49  ;;  %v1867_v33 = vld [vmem:[%s3777_s2 + $0x10] sm:$0xff] }
 0x5f8   :  { %v1392_v4 = vmul.f32 %v2674_v44, %v1383_v32  ;;  %v1868_v44 = vld [vmem:[%s3777_s2 + $0x18] sm:$0xff] }
 0x5f9   :  { %v1391_v51 = vmul.f32 %v1386_v45, %v3537_v26  ;;  %v1390_v53 = vadd.f32 0.5, %v1389_v52  ;;  %v1399_v26 = vld [vmem:[%s3776_s0 + $0xd0] sm:$0xff]  ;;  %v2590_v49 = vpack.c.bf16 %v1868_v44, %v1867_v33  ;;  %v1870_v52 = vld [vmem:[%s3777_s2 + $0x28] sm:$0xff] }
 0x5fb   :  { %v3591_v41 = vadd.f32 %v1392_v4, %v1391_v51 }
 0x5fd   :  { %2677 = vtanh.f32 %v3591_v41 }
 0x607   :  { %v2678_v59 = vpop.eup %2677 }
 0x608   :  { %v3594_v0 = vmul.f32 %v2678_v59, %v1390_v53  ;;  %v1871_v59 = vld [vmem:[%s3777_s2 + $0x30] sm:$0xff] }
 0x60a   :  { %1530 = vmatmul.mubr.f32.vlgmr.msra.gmra.mrb[10].mxu0 %v3594_v0  ;;  %1601 = vmatmul.mubr.f32.vlgmr.msra.gmra.mrb[14].mxu1 %v3594_v0 }
 0x60b   :  { %2525 = vmatpush1.bf16.msra.mxu0 %v3258_v61  ;;  %2557 = vmatpush1.bf16.msra.mxu1 %v3267_v2  ;;  %v1667_v61 = vld [vmem:[%s3775_s1 + $0x120] sm:$0xff] }
 0x60c   :  { %2527 = vmatprep.subr.bf16.mxu0 %v3281_v15  ;;  %2559 = vmatprep.subr.bf16.mxu1 %v3292_v57  ;;  %v1672_v15 = vld [vmem:[%s3775_s1 + $0x148] sm:$0xff] }
 0x60d   :  { %1759 = vmatprep.mubr.f32.mxu0 %v2699_v3  ;;  %1830 = vmatprep.mubr.f32.mxu1 %v2699_v3  ;;  %v1663_v3 = vld [vmem:[%s3775_s1 + $0x100] sm:$0xff]  ;;  %v1676_v57 = vld [vmem:[%s3775_s1 + $0x168] sm:$0xff] }
 0x60e   :  { %v2540_v2 = vpack.c.bf16 %v1667_v61, %v1663_v3  ;;  %v1872_v3 = vld [vmem:[%s3777_s2 + $0x38] sm:$0xff] }
 0x60f   :  { %2529 = vmatpush1.bf16.msra.mxu0 %v3294_v62  ;;  %2561 = vmatpush1.bf16.msra.mxu1 %v3303_v17  ;;  %v2542_v62 = vpack.c.bf16 %v1676_v57, %v1672_v15  ;;  %v1671_v17 = vld [vmem:[%s3775_s1 + $0x140] sm:$0xff]  ;;  %v2598_v61 = vpack.c.bf16 %v1872_v3, %v1871_v59  ;;  %v1875_v57 = vld [vmem:[%s3777_s2 + $0x50] sm:$0xff] }
 0x610   :  { %2531 = vmatprep.subr.bf16.mxu0 %v3317_v43  ;;  %2563 = vmatprep.subr.bf16.mxu1 %v3328_v13  ;;  %v1675_v43 = vld [vmem:[%s3775_s1 + $0x160] sm:$0xff] }
 0x611   :  { %v2544_v13 = vpack.c.bf16 %v1675_v43, %v1671_v17  ;;  %v1877_v43 = vld [vmem:[%s3777_s2 + $0x60] sm:$0xff] }
 0x613   :  { %2533 = vmatpush1.bf16.msra.mxu0 %v3330_v18  ;;  %2565 = vmatpush1.bf16.msra.mxu1 %v3339_v23  ;;  %v1680_v18 = vld [vmem:[%s3775_s1 + $0x188] sm:$0xff] }
 0x614   :  { %2535 = vmatprep.subr.bf16.mxu0 %v3353_v31  ;;  %2567 = vmatprep.subr.bf16.mxu1 %v3364_v38  ;;  %v1684_v23 = vld [vmem:[%s3775_s1 + $0x1a8] sm:$0xff]  ;;  %v1679_v38 = vld [vmem:[%s3775_s1 + $0x180] sm:$0xff] }
 0x615   :  { %v2546_v31 = vpack.c.bf16 %v1684_v23, %v1680_v18  ;;  %v1879_v23 = vld [vmem:[%s3777_s2 + $0x70] sm:$0xff] }
 0x617   :  { %2537 = vmatpush1.bf16.msra.mxu0 %v3366_v39  ;;  %2569 = vmatpush1.bf16.msra.mxu1 %v3375_v50  ;;  %v1683_v39 = vld [vmem:[%s3775_s1 + $0x1a0] sm:$0xff] }
 0x618   :  { %2539 = vmatprep.subr.bf16.mxu0 %v3389_v46  ;;  %2571 = vmatprep.subr.bf16.mxu1 %v3400_v55  ;;  %v2548_v50 = vpack.c.bf16 %v1683_v39, %v1679_v38  ;;  %v1688_v46 = vld [vmem:[%s3775_s1 + $0x1c8] sm:$0xff]  ;;  %v1627_v39 = vld [vmem:[%s3776_s0 + $0xe0] sm:$0xff] }
 0x619   :  { %v1692_v55 = vld [vmem:[%s3775_s1 + $0x1e8] sm:$0xff] }
 0x61b   :  { %2573 = vmatpush1.bf16.msra.mxu1 %v3402_v58  ;;  %2541 = vmatpush1.bf16.msra.mxu0 %v2540_v2  ;;  %v2550_v58 = vpack.c.bf16 %v1692_v55, %v1688_v46  ;;  %v1873_v2 = vld [vmem:[%s3777_s2 + $0x40] sm:$0xff] }
 0x61c   :  { %2575 = vmatprep.subr.bf16.mxu1 %v3415_v1  ;;  %2543 = vmatprep.subr.bf16.mxu0 %v2542_v62  ;;  %v1687_v1 = vld [vmem:[%s3775_s1 + $0x1c0] sm:$0xff]  ;;  %v1876_v62 = vld [vmem:[%s3777_s2 + $0x58] sm:$0xff] }
 0x61d   :  { %v2606_v17 = vpack.c.bf16 %v1876_v62, %v1875_v57 }
 0x61f   :  { %2577 = vmatpush1.bf16.msra.mxu1 %v3423_v9  ;;  %2545 = vmatpush1.bf16.msra.mxu0 %v2544_v13  ;;  %v1691_v9 = vld [vmem:[%s3775_s1 + $0x1e0] sm:$0xff]  ;;  %v1878_v13 = vld [vmem:[%s3777_s2 + $0x68] sm:$0xff] }
 0x620   :  { %2579 = vmatprep.subr.bf16.mxu1 %v3435_v27  ;;  %2547 = vmatprep.subr.bf16.mxu0 %v2546_v31  ;;  %v2552_v27 = vpack.c.bf16 %v1691_v9, %v1687_v1  ;;  %v2610_v18 = vpack.c.bf16 %v1878_v13, %v1877_v43  ;;  %v1880_v31 = vld [vmem:[%s3777_s2 + $0x78] sm:$0xff] }
 0x621   :  { %v2614_v38 = vpack.c.bf16 %v1880_v31, %v1879_v23  ;;  %v1630_v1 = vld [vmem:[%s3776_s0 + $0xf8] sm:$0xff] }
 0x623   :  { %2581 = vmatpush1.bf16.msra.mxu1 %v3443_v24  ;;  %2549 = vmatpush1.bf16.msra.mxu0 %v2548_v50  ;;  %v1865_v24 = vld [vmem:[%s3777_s2] sm:$0xff]  ;;  %v1628_v50 = vld [vmem:[%s3776_s0 + $0xe8] sm:$0xff] }
 0x624   :  { %2583 = vmatprep.subr.bf16.mxu1 %v3455_v48  ;;  %2551 = vmatprep.subr.bf16.mxu0 %v2550_v58  ;;  %v1866_v48 = vld [vmem:[%s3777_s2 + $0x8] sm:$0xff] }
 0x627   :  { %2585 = vmatpush1.bf16.msra.mxu1 %v3463_v19  ;;  %2553 = vmatpush1.bf16.msra.mxu0 %v2552_v27  ;;  %v2586_v19 = vpack.c.bf16 %v1866_v48, %v1865_v24 }
 0x629   :  { %2587 = vmatprep.subr.bf16.mxu0 %v2586_v19 }
 0x6dd   :  { %v1531_v20 = vpop.f32.mrb[10].mxu0  ;;  %v1602_v7 = vpop.f32.mrb[14].mxu1 }
 0x6de   :  { %v1607_v34 = vadd.f32 %v1531_v20, %v1397_v5  ;;  %v1533_v35 = vpop.f32.mrb[11].mxu0  ;;  %v1604_v11 = vpop.f32.mrb[15].mxu1  ;;  %v1609_v21 = vadd.f32 %v1602_v7, %v1399_v26 }
 0x6df   :  { %v1608_v14 = vadd.f32 %v1533_v35, %v1398_v8  ;;  %v1610_v63 = vadd.f32 %v1604_v11, %v1400_v56 }
 0x6e0   :  { %2679 = vtanh.f32 %v1607_v34 }
 0x6e1   :  { %2681 = vtanh.f32 %v1608_v14  ;;  %v2005_v14 = vld [vmem:[%s3778_s3] ss:$0 sm:$0xff] }
 0x6e2   :  { %2683 = vtanh.f32 %v1609_v21 }
 0x6e3   :  { %2685 = vtanh.f32 %v1610_v63 }
 0x6ea   :  { %v2680_v16 = vpop.eup %2679 }
 0x6eb   :  { %v1612_v25 = vmul.f32 0.5, %v2680_v16  ;;  %v2682_v42 = vpop.eup %2681 }
 0x6ec   :  { %v1615_v54 = vmul.f32 0.5, %v2682_v42  ;;  %v2684_v60 = vpop.eup %2683 }
 0x6ed   :  { %v1613_v6 = vadd.f32 0.5, %v1612_v25  ;;  %v2686_v36 = vpop.eup %2685 }
 0x6ee   :  { %v1616_v22 = vadd.f32 0.5, %v1615_v54  ;;  %v1619_v32 = vmul.f32 0.5, %v2686_v36 }
 0x6ef   :  { %v1622_v28 = vmul.f32 %v2684_v60, %v1613_v6 }
 0x6f0   :  { %v1621_v29 = vmul.f32 %v1616_v22, %v3591_v41  ;;  %v1620_v45 = vadd.f32 0.5, %v1619_v32  ;;  %v1869_v41 = vld [vmem:[%s3777_s2 + $0x20] sm:$0xff] }
 0x6f1   :  { %v2594_v53 = vpack.c.bf16 %v1870_v52, %v1869_v41 }
 0x6f2   :  { %v3684_v30 = vadd.f32 %v1622_v28, %v1621_v29 }
 0x6f4   :  { %2687 = vtanh.f32 %v3684_v30 }
 0x6fe   :  { %v2688_v4 = vpop.eup %2687 }
 0x6ff   :  { %v1625_v51 = vmul.f32 %v2688_v4, %v1620_v45 }
 0x701   :  { %1760 = vmatmul.mubr.f32.vlgmr.msra.gmra.mrb[12].mxu0 %v1625_v51  ;;  %1831 = vmatmul.mubr.f32.vlgmr.msra.gmra.mrb[16].mxu1 %v1625_v51 }
 0x702   :  { %2589 = vmatpush3.bf16.msra.mxu0 %v2586_v19  ;;  %2062 = vmatprep.mubr.f32.mxu0 %v3068_v37  ;;  %v1874_v37 = vld [vmem:[%s3777_s2 + $0x48] sm:$0xff] }
 0x703   :  { %2591 = vmatprep.subr.bf16.mxu0 %v2590_v49  ;;  %v2602_v15 = vpack.c.bf16 %v1874_v37, %v1873_v2 }
 0x706   :  { %2593 = vmatpush3.bf16.msra.mxu0 %v2590_v49 }
 0x707   :  { %2595 = vmatprep.subr.bf16.mxu0 %v2594_v53 }
 0x70a   :  { %2597 = vmatpush3.bf16.msra.mxu0 %v2594_v53 }
 0x70b   :  { %2599 = vmatprep.subr.bf16.mxu0 %v2598_v61 }
 0x70e   :  { %2601 = vmatpush3.bf16.msra.mxu0 %v2598_v61 }
 0x70f   :  { %2603 = vmatprep.subr.bf16.mxu0 %v2602_v15 }
 0x712   :  { %2605 = vmatpush3.bf16.msra.mxu0 %v2602_v15 }
 0x713   :  { %2607 = vmatprep.subr.bf16.mxu0 %v2606_v17 }
 0x716   :  { %2609 = vmatpush3.bf16.msra.mxu0 %v2606_v17 }
 0x717   :  { %2611 = vmatprep.subr.bf16.mxu0 %v2610_v18 }
 0x71a   :  { %2613 = vmatpush3.bf16.msra.mxu0 %v2610_v18 }
 0x71b   :  { %2615 = vmatprep.subr.bf16.mxu0 %v2614_v38 }
 0x71e   :  { %2617 = vmatpush3.bf16.msra.mxu0 %v2614_v38 }
 0x721   :  { %2063 = vmatmul.mubr.f32.vlgmr.msra.gmra.mrb[14].mxu0 %v3122_v10  ;;  %v1629_v10 = vld [vmem:[%s3776_s0 + $0xf0] sm:$0xff] }
 0x722   :  { %2065 = vmatprep.mubr.f32.mxu0 %v3230_v47 }
 0x725   :  { %2066 = vmatmul.mubr.f32.gmra.mrb[16].mxu0 %v3486_v12 }
 0x726   :  { %2068 = vmatprep.mubr.f32.mxu0 %v3540_v40 }
 0x729   :  { %2069 = vmatmul.mubr.f32.gmra.mrb[18].mxu0 %v3594_v0 }
 0x72a   :  { %2071 = vmatprep.mubr.f32.mxu0 %v1625_v51 }
 0x7d4   :  { %v1761_v46 = vpop.f32.mrb[12].mxu0  ;;  %v1832_v47 = vpop.f32.mrb[16].mxu1 }
 0x7d5   :  { %v1837_v12 = vadd.f32 %v1761_v46, %v1627_v39  ;;  %v1763_v55 = vpop.f32.mrb[13].mxu0  ;;  %v1834_v40 = vpop.f32.mrb[17].mxu1  ;;  %v1839_v0 = vadd.f32 %v1832_v47, %v1629_v10 }
 0x7d6   :  { %v1838_v58 = vadd.f32 %v1763_v55, %v1628_v50  ;;  %v1840_v9 = vadd.f32 %v1834_v40, %v1630_v1 }
 0x7d7   :  { %2689 = vtanh.f32 %v1837_v12 }
 0x7d8   :  { %2691 = vtanh.f32 %v1838_v58 }
 0x7d9   :  { %2693 = vtanh.f32 %v1839_v0 }
 0x7da   :  { %2695 = vtanh.f32 %v1840_v9 }
 0x7e1   :  { %v2690_v27 = vpop.eup %2689 }
 0x7e2   :  { %v1842_v24 = vmul.f32 0.5, %v2690_v27  ;;  %v2692_v48 = vpop.eup %2691 }
 0x7e3   :  { %v1845_v5 = vmul.f32 0.5, %v2692_v48  ;;  %v2694_v8 = vpop.eup %2693 }
 0x7e4   :  { %v1843_v19 = vadd.f32 0.5, %v1842_v24  ;;  %v2696_v35 = vpop.eup %2695 }
 0x7e5   :  { %v1846_v20 = vadd.f32 0.5, %v1845_v5  ;;  %v1849_v11 = vmul.f32 0.5, %v2696_v35 }
 0x7e6   :  { %v1852_v26 = vmul.f32 %v2694_v8, %v1843_v19 }
 0x7e7   :  { %v1851_v7 = vmul.f32 %v1846_v20, %v3684_v30  ;;  %v1850_v56 = vadd.f32 0.5, %v1849_v11 }
 0x7e9   :  { %v1853_v34 = vadd.f32 %v1852_v26, %v1851_v7 }
 0x7eb   :  { %2697 = vtanh.f32 %v1853_v34 }
 0x7f4   :  { %v2064_v21 = vpop.f32.mrb[14].mxu0 }
 0x7f5   :  { %v1960_v63 = vadd.f32 %v2064_v21, %v2005_v14  ;;  %v1954_v16 = vpop.f32.mrb[15].mxu0  ;;  %v2698_v25 = vpop.eup %2697 }
 0x7f6   :  { %v1955_v42 = vadd.f32 %v2005_v14, %v1954_v16  ;;  %v1855_v6 = vmul.f32 %v2698_v25, %v1850_v56 }
 0x7f7   :  { %1994 = vst [vmem:[%s3779_s4 + $0x8] sm:$0xff] %v1960_v63 }
 0x7f8   :  { %1993 = vst [vmem:[%s3779_s4] sm:$0xff] %v1955_v42  ;;  %v2067_v54 = vpop.f32.mrb[16].mxu0  ;;  %2072 = vmatmul.mubr.f32.gmra.mrb[20].mxu0 %v1855_v6 }
 0x7f9   :  { %v1970_v60 = vadd.f32 %v2067_v54, %v2005_v14  ;;  %v1964_v22 = vpop.f32.mrb[17].mxu0 }
 0x7fa   :  { %v1965_v28 = vadd.f32 %v2005_v14, %v1964_v22 }
 0x7fb   :  { %1996 = vst [vmem:[%s3779_s4 + $0x18] sm:$0xff] %v1970_v60 }
 0x7fc   :  { %1995 = vst [vmem:[%s3779_s4 + $0x10] sm:$0xff] %v1965_v28  ;;  %v2070_v29 = vpop.f32.mrb[18].mxu0 }
 0x7fd   :  { %v1980_v30 = vadd.f32 %v2070_v29, %v2005_v14  ;;  %v1974_v36 = vpop.f32.mrb[19].mxu0 }
 0x7fe   :  { %v1975_v32 = vadd.f32 %v2005_v14, %v1974_v36 }
 0x7ff   :  { %1998 = vst [vmem:[%s3779_s4 + $0x28] sm:$0xff] %v1980_v30 }
 0x800   :  { %1997 = vst [vmem:[%s3779_s4 + $0x20] sm:$0xff] %v1975_v32 }
 0x8cb   :  { %v2073_v33 = vpop.f32.mrb[20].mxu0 }
 0x8cc   :  { %v1990_v44 = vadd.f32 %v2073_v33, %v2005_v14  ;;  %v1984_v45 = vpop.f32.mrb[21].mxu0 }
 0x8cd   :  { %v1985_v4 = vadd.f32 %v2005_v14, %v1984_v45 }
 0x8ce   :  { %2000 = vst [vmem:[%s3779_s4 + $0x38] sm:$0xff] %v1990_v44 }
 0x8cf   :  { %1999 = vst [vmem:[%s3779_s4 + $0x30] sm:$0xff] %v1985_v4 }

</bundles_post_ra>
